<compile_context>
chip_gen: v5e
topology: v5e:2x2
jax: 0.10.0
libtpu: 0.0.40
codegen_flags: <defaults>
</compile_context>

<pallas_src>
import math

import jax
import jax.numpy as jnp
from jax.experimental import pallas as pl
from jax.experimental.pallas import tpu as pltpu


# ----------------------------------------------------------------------------
# Kernel
# ----------------------------------------------------------------------------
def _norm(v, alpha, bias, eps=1e-6):
    """PyTorch Norm: alpha*(x-mean)/(std_unbiased+eps)+bias (f32 math)."""
    d = v.shape[-1]
    mu = jnp.mean(v, axis=-1, keepdims=True)
    c = v - mu
    var = jnp.sum(c * c, axis=-1, keepdims=True) * (1.0 / (d - 1))
    inv = pl.reciprocal(jnp.sqrt(var) + eps, approx=True)  # EUP slot, ~free
    return alpha * (c * inv) + bias


def condition_layer_kernel(
    x_ref, e_ref,
    wq_ref, bq_ref, wk_ref, bk_ref, wv_ref, bv_ref, wo_ref, bo_ref,
    a1_ref, c1_ref, a2_ref, c2_ref,
    w1_ref, b1_ref, w2_ref, b2_ref,
    o_ref,
):
    n_head, _, d_k = wq_ref.shape
    scale = 1.0 / math.sqrt(d_k)

    x = x_ref[...]          # (TQ, D)  f32
    e = e_ref[...]          # (Lk, D)  bf16 (cast once in the wrapper)
    tq, d_model = x.shape

    # ----- Norm 1 (f32) -----
    x2 = _norm(x, a1_ref[...], c1_ref[...])
    x2b = x2.astype(jnp.bfloat16)

    # ----- Multi-head cross attention: q from norm(x), k/v from e_outputs -----
    # Per-head weights were pre-split in the wrapper (wq/wk/wv: (H, D, dk),
    # wo: (H, dk, D)), so there are no lane-misaligned activation slices and
    # no concatenate: the output projection is accumulated head by head.
    # TODO(synk): flash-style Lk tiling (online softmax) for very long
    # e_outputs; here the full (Lk, D) block stays resident per grid step.
    att = jnp.zeros((tq, d_model), jnp.float32)
    for h in range(n_head):
        qh = jnp.dot(x2b, wq_ref[h], preferred_element_type=jnp.float32) + bq_ref[h]
        kh = jnp.dot(e,   wk_ref[h], preferred_element_type=jnp.float32) + bk_ref[h]
        vh = jnp.dot(e,   wv_ref[h], preferred_element_type=jnp.float32) + bv_ref[h]

        s = jnp.einsum(
            "qd,kd->qk", qh.astype(jnp.bfloat16), kh.astype(jnp.bfloat16),
            preferred_element_type=jnp.float32) * scale
        s = s - jnp.max(s, axis=-1, keepdims=True)          # stable softmax, f32
        p = jnp.exp(s)
        p = p * pl.reciprocal(jnp.sum(p, axis=-1, keepdims=True), approx=True)

        oh = jnp.dot(p.astype(jnp.bfloat16), vh.astype(jnp.bfloat16),
                     preferred_element_type=jnp.float32)     # (TQ, dk)
        att = att + jnp.dot(oh.astype(jnp.bfloat16), wo_ref[h],
                            preferred_element_type=jnp.float32)
    att = att + bo_ref[...]
    # dropout_1: identity (eval mode)

    # ----- Norm 2 + FeedForward -----
    x3 = _norm(att, a2_ref[...], c2_ref[...])
    h1 = jnp.dot(x3.astype(jnp.bfloat16), w1_ref[...],
                 preferred_element_type=jnp.float32) + b1_ref[...]
    h1 = jnp.maximum(h1, 0.0)
    y = jnp.dot(h1.astype(jnp.bfloat16), w2_ref[...],
                preferred_element_type=jnp.float32) + b2_ref[...]
    # dropout_2: identity (eval mode)
    # TODO(synk): training-mode dropout (Bernoulli masks) not reproduced.

    o_ref[...] = y.astype(o_ref.dtype)


# ----------------------------------------------------------------------------
# Wrapper
# ----------------------------------------------------------------------------
def _prep_params(params, d_model, n_head):
    """One-time (wrapper-side) repack: transpose to [in,out], split per head,
    cast matmul weights to bf16. Biases / norm params stay f32."""
    d_k = d_model // n_head
    mm = jnp.bfloat16

    def split_in(w):    # nn.Linear W (H*dk, D) -> per-head [in, out]: (H, D, dk)
        return jnp.transpose(w.reshape(n_head, d_k, d_model), (0, 2, 1)).astype(mm)

    def split_bias(b):  # (1, H*dk) -> (H, 1, dk)
        return b.reshape(n_head, d_k)[:, None, :].astype(jnp.float32)

    return dict(
        wq=split_in(params["wq"]), bq=split_bias(params["bq"]),
        wk=split_in(params["wk"]), bk=split_bias(params["bk"]),
        wv=split_in(params["wv"]), bv=split_bias(params["bv"]),
        # wo: (D, H*dk) torch-format -> per-head (H, dk, D) so concat+Wo
        # becomes a per-head accumulation (no concatenate in the kernel).
        wo=params["wo"].T.reshape(n_head, d_k, d_model).astype(mm),
        bo=params["bo"].astype(jnp.float32),
        a1=params["a1"].astype(jnp.float32), c1=params["c1"].astype(jnp.float32),
        a2=params["a2"].astype(jnp.float32), c2=params["c2"].astype(jnp.float32),
        w1=params["w1"].T.astype(mm), b1=params["b1"].astype(jnp.float32),
        w2=params["w2"].T.astype(mm), b2=params["b2"].astype(jnp.float32),
    )


def condition_layer(x, e_outputs, params, n_head, *, q_tile=256):
    """x: (B, Lq, D), e_outputs: (B, Lk, D) -> (B, Lq, D)."""
    B, Lq, D = x.shape
    _, Lk, _ = e_outputs.shape
    assert D % n_head == 0

    tq = min(Lq, q_tile)
    assert Lq % tq == 0 and (tq % 8 == 0 or tq == Lq)
    n_q = Lq // tq

    prepped = _prep_params(params, D, n_head)
    weight_names = ["wq", "bq", "wk", "bk", "wv", "bv", "wo", "bo",
                    "a1", "c1", "a2", "c2", "w1", "b1", "w2", "b2"]
    weights = [prepped[n] for n in weight_names]

    e_mm = e_outputs.astype(jnp.bfloat16)  # K/V matmul operand dtype

    def resident(arr):
        # small parameter array: whole array resident in VMEM, constant index map
        zeros = (0,) * arr.ndim
        return pl.BlockSpec(arr.shape, lambda b, qi: zeros)

    in_specs = [
        pl.BlockSpec((pl.Squeezed(), tq, D), lambda b, qi: (b, qi, 0)),  # x
        pl.BlockSpec((pl.Squeezed(), Lk, D), lambda b, qi: (b, 0, 0)),   # e_outputs
    ] + [resident(w) for w in weights]

    out_spec = pl.BlockSpec((pl.Squeezed(), tq, D), lambda b, qi: (b, qi, 0))

    return pl.pallas_call(
        condition_layer_kernel,
        out_shape=jax.ShapeDtypeStruct((B, Lq, D), x.dtype),
        grid_spec=pl.GridSpec(
            grid=(B, n_q),
            in_specs=in_specs,
            out_specs=out_spec,
        ),
        compiler_params=pltpu.CompilerParams(
            dimension_semantics=("parallel", "parallel"),
            vmem_limit_bytes=64 * 1024 * 1024,
        ),
    )(x, e_mm, *weights)


# ----------------------------------------------------------------------------
# Params + pure-JAX reference (f32) for validation
# ----------------------------------------------------------------------------
def init_params(key, d_model, d_ff):
    ks = jax.random.split(key, 6)
    std = 0.02

    def lin(k, out_f, in_f):
        return std * jax.random.normal(k, (out_f, in_f), jnp.float32)

    return {
        # attention projections (nn.Linear: W [out, in], b [out])
        "wq": lin(ks[0], d_model, d_model), "bq": jnp.zeros((1, d_model), jnp.float32),
        "wk": lin(ks[1], d_model, d_model), "bk": jnp.zeros((1, d_model), jnp.float32),
        "wv": lin(ks[2], d_model, d_model), "bv": jnp.zeros((1, d_model), jnp.float32),
        "wo": lin(ks[3], d_model, d_model), "bo": jnp.zeros((1, d_model), jnp.float32),
        # Norm_1 / Norm_2 (alpha=ones, bias=zeros as in PyTorch init)
        "a1": jnp.ones((1, d_model), jnp.float32), "c1": jnp.zeros((1, d_model), jnp.float32),
        "a2": jnp.ones((1, d_model), jnp.float32), "c2": jnp.zeros((1, d_model), jnp.float32),
        # FeedForward
        "w1": lin(ks[4], d_ff, d_model), "b1": jnp.zeros((1, d_ff), jnp.float32),
        "w2": lin(ks[5], d_model, d_ff), "b2": jnp.zeros((1, d_model), jnp.float32),
    }


def condition_layer_ref(x, e, params, n_head):
    def norm(v, a, b, eps=1e-6):
        mu = jnp.mean(v, -1, keepdims=True)
        var = jnp.sum((v - mu) ** 2, -1, keepdims=True) / (v.shape[-1] - 1)
        return a * (v - mu) / (jnp.sqrt(var) + eps) + b

    B, Lq, D = x.shape
    dk = D // n_head
    x2 = norm(x, params["a1"], params["c1"])
    q = x2 @ params["wq"].T + params["bq"]
    k = e @ params["wk"].T + params["bk"]
    v = e @ params["wv"].T + params["bv"]

    def split(t):
        b, l, _ = t.shape
        return t.reshape(b, l, n_head, dk).transpose(0, 2, 1, 3)

    qh, kh, vh = split(q), split(k), split(v)
    s = jnp.einsum("bhqd,bhkd->bhqk", qh, kh) / math.sqrt(dk)
    p = jax.nn.softmax(s, axis=-1)
    o = jnp.einsum("bhqk,bhkd->bhqd", p, vh).transpose(0, 2, 1, 3).reshape(B, Lq, D)
    att = o @ params["wo"].T + params["bo"]
    x3 = norm(att, params["a2"], params["c2"])
    h1 = jax.nn.relu(x3 @ params["w1"].T + params["b1"])
    return h1 @ params["w2"].T + params["b2"]


if __name__ == "__main__":
    B, Lq, Lk = 2, 8, 8
    d_model, n_head, d_ff = 128, 4, 256   # lane-dense d_model (multiple of 128)

    key = jax.random.PRNGKey(0)
    kx, ke, kp = jax.random.split(key, 3)

    x = jax.random.normal(kx, (B, Lq, d_model), jnp.float32)
    e_outputs = jax.random.normal(ke, (B, Lk, d_model), jnp.float32)
    params = init_params(kp, d_model, d_ff)

    out = condition_layer(x, e_outputs, params, n_head)
    out = jax.block_until_ready(out)

    assert out.shape == (B, Lq, d_model)
    assert bool(jnp.all(jnp.isfinite(out)))

    ref = condition_layer_ref(x, e_outputs, params, n_head)
    err = float(jnp.max(jnp.abs(out - ref)))
    assert err < 3e-2, f"max abs err vs f32 reference: {err}"

    print("KERNEL_OK")
</pallas_src>

<mosaic_0001>
module attributes {stable_mosaic.version = 11 : i64} {
  func.func @condition_layer_kernel(%arg0: i32, %arg1: i32, %arg2: memref<1x8x128xf32, #tpu.memory_space<vmem>>, %arg3: memref<1x8x128xbf16, #tpu.memory_space<vmem>>, %arg4: memref<4x128x32xbf16, #tpu.memory_space<vmem>>, %arg5: memref<4x1x32xf32, #tpu.memory_space<vmem>>, %arg6: memref<4x128x32xbf16, #tpu.memory_space<vmem>>, %arg7: memref<4x1x32xf32, #tpu.memory_space<vmem>>, %arg8: memref<4x128x32xbf16, #tpu.memory_space<vmem>>, %arg9: memref<4x1x32xf32, #tpu.memory_space<vmem>>, %arg10: memref<4x32x128xbf16, #tpu.memory_space<vmem>>, %arg11: memref<1x128xf32, #tpu.memory_space<vmem>>, %arg12: memref<1x128xf32, #tpu.memory_space<vmem>>, %arg13: memref<1x128xf32, #tpu.memory_space<vmem>>, %arg14: memref<1x128xf32, #tpu.memory_space<vmem>>, %arg15: memref<1x128xf32, #tpu.memory_space<vmem>>, %arg16: memref<128x256xbf16, #tpu.memory_space<vmem>>, %arg17: memref<1x256xf32, #tpu.memory_space<vmem>>, %arg18: memref<256x128xbf16, #tpu.memory_space<vmem>>, %arg19: memref<1x128xf32, #tpu.memory_space<vmem>>, %arg20: memref<1x8x128xf32, #tpu.memory_space<vmem>>) attributes {dimension_semantics = [#tpu.dimension_semantics<parallel>, #tpu.dimension_semantics<parallel>], iteration_bounds = array<i64: 2, 1>, scalar_prefetch = 0 : i64, scratch_operands = 0 : i64, tpu.core_type = #tpu.core_type<tc>, window_params = [{transform_indices = @transform_0, window_bounds = array<i64: 1, 8, 128>}, {transform_indices = @transform_1, window_bounds = array<i64: 1, 8, 128>}, {pipeline_mode = #tpu.pipeline_mode<synchronous>, transform_indices = @transform_2, window_bounds = array<i64: 4, 128, 32>}, {pipeline_mode = #tpu.pipeline_mode<synchronous>, transform_indices = @transform_3, window_bounds = array<i64: 4, 1, 32>}, {pipeline_mode = #tpu.pipeline_mode<synchronous>, transform_indices = @transform_4, window_bounds = array<i64: 4, 128, 32>}, {pipeline_mode = #tpu.pipeline_mode<synchronous>, transform_indices = @transform_5, window_bounds = array<i64: 4, 1, 32>}, {pipeline_mode = #tpu.pipeline_mode<synchronous>, transform_indices = @transform_6, window_bounds = array<i64: 4, 128, 32>}, {pipeline_mode = #tpu.pipeline_mode<synchronous>, transform_indices = @transform_7, window_bounds = array<i64: 4, 1, 32>}, {pipeline_mode = #tpu.pipeline_mode<synchronous>, transform_indices = @transform_8, window_bounds = array<i64: 4, 32, 128>}, {pipeline_mode = #tpu.pipeline_mode<synchronous>, transform_indices = @transform_9, window_bounds = array<i64: 1, 128>}, {pipeline_mode = #tpu.pipeline_mode<synchronous>, transform_indices = @transform_10, window_bounds = array<i64: 1, 128>}, {pipeline_mode = #tpu.pipeline_mode<synchronous>, transform_indices = @transform_11, window_bounds = array<i64: 1, 128>}, {pipeline_mode = #tpu.pipeline_mode<synchronous>, transform_indices = @transform_12, window_bounds = array<i64: 1, 128>}, {pipeline_mode = #tpu.pipeline_mode<synchronous>, transform_indices = @transform_13, window_bounds = array<i64: 1, 128>}, {pipeline_mode = #tpu.pipeline_mode<synchronous>, transform_indices = @transform_14, window_bounds = array<i64: 128, 256>}, {pipeline_mode = #tpu.pipeline_mode<synchronous>, transform_indices = @transform_15, window_bounds = array<i64: 1, 256>}, {pipeline_mode = #tpu.pipeline_mode<synchronous>, transform_indices = @transform_16, window_bounds = array<i64: 256, 128>}, {pipeline_mode = #tpu.pipeline_mode<synchronous>, transform_indices = @transform_17, window_bounds = array<i64: 1, 128>}, {transform_indices = @transform_18, window_bounds = array<i64: 1, 8, 128>}]} {
    %c0 = arith.constant 0 : index
    %c0_0 = arith.constant 0 : index
    %c0_1 = arith.constant 0 : index
    %0 = vector.load %arg2[%c0, %c0_0, %c0_1] : memref<1x8x128xf32, #tpu.memory_space<vmem>>, vector<1x8x128xf32>
    %1 = vector.shape_cast %0 : vector<1x8x128xf32> to vector<8x128xf32>
    %c0_2 = arith.constant 0 : index
    %c0_3 = arith.constant 0 : index
    %c0_4 = arith.constant 0 : index
    %2 = vector.load %arg3[%c0_2, %c0_3, %c0_4] : memref<1x8x128xbf16, #tpu.memory_space<vmem>>, vector<1x8x128xbf16>
    %3 = vector.shape_cast %2 : vector<1x8x128xbf16> to vector<8x128xbf16>
    %c0_5 = arith.constant 0 : index
    %c0_6 = arith.constant 0 : index
    %4 = vector.load %arg12[%c0_5, %c0_6] : memref<1x128xf32, #tpu.memory_space<vmem>>, vector<1x128xf32>
    %c0_7 = arith.constant 0 : index
    %c0_8 = arith.constant 0 : index
    %5 = vector.load %arg13[%c0_7, %c0_8] : memref<1x128xf32, #tpu.memory_space<vmem>>, vector<1x128xf32>
    %cst = arith.constant dense<0.000000e+00> : vector<8xf32>
    %6 = vector.multi_reduction <add>, %1, %cst [1] : vector<8x128xf32> to vector<8xf32>
    %7 = vector.shape_cast %6 : vector<8xf32> to vector<8x1xf32>
    %cst_9 = arith.constant 1.280000e+02 : f32
    %8 = vector.broadcast %cst_9 : f32 to vector<8x1xf32>
    %9 = arith.divf %7, %8 : vector<8x1xf32>
    %10 = vector.broadcast %9 : vector<8x1xf32> to vector<8x128xf32>
    %11 = arith.subf %1, %10 : vector<8x128xf32>
    %12 = arith.mulf %11, %11 : vector<8x128xf32>
    %cst_10 = arith.constant dense<0.000000e+00> : vector<8xf32>
    %13 = vector.multi_reduction <add>, %12, %cst_10 [1] : vector<8x128xf32> to vector<8xf32>
    %14 = vector.shape_cast %13 : vector<8xf32> to vector<8x1xf32>
    %cst_11 = arith.constant 0.00787401571 : f32
    %15 = vector.broadcast %cst_11 : f32 to vector<8x1xf32>
    %16 = arith.mulf %14, %15 : vector<8x1xf32>
    %17 = math.sqrt %16 : vector<8x1xf32>
    %cst_12 = arith.constant 9.99999997E-7 : f32
    %18 = vector.broadcast %cst_12 : f32 to vector<8x1xf32>
    %19 = arith.addf %17, %18 : vector<8x1xf32>
    %20 = tpu.reciprocal %19 {approx = true} : vector<8x1xf32> -> vector<8x1xf32>
    %21 = vector.broadcast %20 : vector<8x1xf32> to vector<8x128xf32>
    %22 = arith.mulf %11, %21 : vector<8x128xf32>
    %23 = vector.broadcast %4 : vector<1x128xf32> to vector<8x128xf32>
    %24 = arith.mulf %23, %22 : vector<8x128xf32>
    %25 = vector.broadcast %5 : vector<1x128xf32> to vector<8x128xf32>
    %26 = arith.addf %24, %25 : vector<8x128xf32>
    %27 = arith.truncf %26 : vector<8x128xf32> to vector<8x128xbf16>
    %cst_13 = arith.constant 0.000000e+00 : f32
    %28 = vector.broadcast %cst_13 : f32 to vector<8x128xf32>
    %c0_14 = arith.constant 0 : index
    %c0_15 = arith.constant 0 : index
    %c0_16 = arith.constant 0 : index
    %29 = vector.load %arg4[%c0_14, %c0_15, %c0_16] : memref<4x128x32xbf16, #tpu.memory_space<vmem>>, vector<1x128x32xbf16>
    %30 = vector.shape_cast %29 : vector<1x128x32xbf16> to vector<128x32xbf16>
    %cst_17 = arith.constant dense<0.000000e+00> : vector<8x32xf32>
    %31 = tpu.matmul %27, %30, %cst_17 {dimension_numbers = #tpu.dot_dimension_numbers<[1], [0], [0], [1], [0, 0, 1, 1], [], []>} : vector<8x128xbf16>, vector<128x32xbf16>, vector<8x32xf32> -> vector<8x32xf32>
    %c0_18 = arith.constant 0 : index
    %c0_19 = arith.constant 0 : index
    %c0_20 = arith.constant 0 : index
    %32 = vector.load %arg5[%c0_18, %c0_19, %c0_20] : memref<4x1x32xf32, #tpu.memory_space<vmem>>, vector<1x1x32xf32>
    %33 = vector.shape_cast %32 : vector<1x1x32xf32> to vector<1x32xf32>
    %34 = vector.broadcast %33 : vector<1x32xf32> to vector<8x32xf32>
    %35 = arith.addf %31, %34 : vector<8x32xf32>
    %c0_21 = arith.constant 0 : index
    %c0_22 = arith.constant 0 : index
    %c0_23 = arith.constant 0 : index
    %36 = vector.load %arg6[%c0_21, %c0_22, %c0_23] : memref<4x128x32xbf16, #tpu.memory_space<vmem>>, vector<1x128x32xbf16>
    %37 = vector.shape_cast %36 : vector<1x128x32xbf16> to vector<128x32xbf16>
    %cst_24 = arith.constant dense<0.000000e+00> : vector<8x32xf32>
    %38 = tpu.matmul %3, %37, %cst_24 {dimension_numbers = #tpu.dot_dimension_numbers<[1], [0], [0], [1], [0, 0, 1, 1], [], []>} : vector<8x128xbf16>, vector<128x32xbf16>, vector<8x32xf32> -> vector<8x32xf32>
    %c0_25 = arith.constant 0 : index
    %c0_26 = arith.constant 0 : index
    %c0_27 = arith.constant 0 : index
    %39 = vector.load %arg7[%c0_25, %c0_26, %c0_27] : memref<4x1x32xf32, #tpu.memory_space<vmem>>, vector<1x1x32xf32>
    %40 = vector.shape_cast %39 : vector<1x1x32xf32> to vector<1x32xf32>
    %41 = vector.broadcast %40 : vector<1x32xf32> to vector<8x32xf32>
    %42 = arith.addf %38, %41 : vector<8x32xf32>
    %c0_28 = arith.constant 0 : index
    %c0_29 = arith.constant 0 : index
    %c0_30 = arith.constant 0 : index
    %43 = vector.load %arg8[%c0_28, %c0_29, %c0_30] : memref<4x128x32xbf16, #tpu.memory_space<vmem>>, vector<1x128x32xbf16>
    %44 = vector.shape_cast %43 : vector<1x128x32xbf16> to vector<128x32xbf16>
    %cst_31 = arith.constant dense<0.000000e+00> : vector<8x32xf32>
    %45 = tpu.matmul %3, %44, %cst_31 {dimension_numbers = #tpu.dot_dimension_numbers<[1], [0], [0], [1], [0, 0, 1, 1], [], []>} : vector<8x128xbf16>, vector<128x32xbf16>, vector<8x32xf32> -> vector<8x32xf32>
    %c0_32 = arith.constant 0 : index
    %c0_33 = arith.constant 0 : index
    %c0_34 = arith.constant 0 : index
    %46 = vector.load %arg9[%c0_32, %c0_33, %c0_34] : memref<4x1x32xf32, #tpu.memory_space<vmem>>, vector<1x1x32xf32>
    %47 = vector.shape_cast %46 : vector<1x1x32xf32> to vector<1x32xf32>
    %48 = vector.broadcast %47 : vector<1x32xf32> to vector<8x32xf32>
    %49 = arith.addf %45, %48 : vector<8x32xf32>
    %50 = arith.truncf %35 : vector<8x32xf32> to vector<8x32xbf16>
    %51 = arith.truncf %42 : vector<8x32xf32> to vector<8x32xbf16>
    "tpu.trace_start"() <{level = 10 : i32, message = "qd,kd->qk"}> : () -> ()
    %cst_35 = arith.constant dense<0.000000e+00> : vector<8x8xf32>
    %52 = tpu.matmul %50, %51, %cst_35 {dimension_numbers = #tpu.dot_dimension_numbers<[1], [1], [0], [0], [0, 0, 1, 0], [], []>} : vector<8x32xbf16>, vector<8x32xbf16>, vector<8x8xf32> -> vector<8x8xf32>
    "tpu.trace_stop"() : () -> ()
    %cst_36 = arith.constant 0.176776692 : f32
    %53 = vector.broadcast %cst_36 : f32 to vector<8x8xf32>
    %54 = arith.mulf %52, %53 : vector<8x8xf32>
    %cst_37 = arith.constant dense<0xFF800000> : vector<8xf32>
    %55 = vector.multi_reduction <maximumf>, %54, %cst_37 [1] : vector<8x8xf32> to vector<8xf32>
    %56 = vector.shape_cast %55 : vector<8xf32> to vector<8x1xf32>
    %57 = vector.broadcast %56 : vector<8x1xf32> to vector<8x8xf32>
    %58 = arith.subf %54, %57 : vector<8x8xf32>
    %59 = math.exp %58 : vector<8x8xf32>
    %cst_38 = arith.constant dense<0.000000e+00> : vector<8xf32>
    %60 = vector.multi_reduction <add>, %59, %cst_38 [1] : vector<8x8xf32> to vector<8xf32>
    %61 = vector.shape_cast %60 : vector<8xf32> to vector<8x1xf32>
    %62 = tpu.reciprocal %61 {approx = true} : vector<8x1xf32> -> vector<8x1xf32>
    %63 = vector.broadcast %62 : vector<8x1xf32> to vector<8x8xf32>
    %64 = arith.mulf %59, %63 : vector<8x8xf32>
    %65 = arith.truncf %64 : vector<8x8xf32> to vector<8x8xbf16>
    %66 = arith.truncf %49 : vector<8x32xf32> to vector<8x32xbf16>
    %cst_39 = arith.constant dense<0.000000e+00> : vector<8x32xf32>
    %67 = tpu.matmul %65, %66, %cst_39 {dimension_numbers = #tpu.dot_dimension_numbers<[1], [0], [0], [1], [0, 0, 1, 1], [], []>} : vector<8x8xbf16>, vector<8x32xbf16>, vector<8x32xf32> -> vector<8x32xf32>
    %68 = arith.truncf %67 : vector<8x32xf32> to vector<8x32xbf16>
    %c0_40 = arith.constant 0 : index
    %c0_41 = arith.constant 0 : index
    %c0_42 = arith.constant 0 : index
    %69 = vector.load %arg10[%c0_40, %c0_41, %c0_42] : memref<4x32x128xbf16, #tpu.memory_space<vmem>>, vector<1x32x128xbf16>
    %70 = vector.shape_cast %69 : vector<1x32x128xbf16> to vector<32x128xbf16>
    %cst_43 = arith.constant dense<0.000000e+00> : vector<8x128xf32>
    %71 = tpu.matmul %68, %70, %cst_43 {dimension_numbers = #tpu.dot_dimension_numbers<[1], [0], [0], [1], [0, 0, 1, 1], [], []>} : vector<8x32xbf16>, vector<32x128xbf16>, vector<8x128xf32> -> vector<8x128xf32>
    %72 = arith.addf %28, %71 : vector<8x128xf32>
    %c1 = arith.constant 1 : index
    %c0_44 = arith.constant 0 : index
    %c0_45 = arith.constant 0 : index
    %73 = vector.load %arg4[%c1, %c0_44, %c0_45] : memref<4x128x32xbf16, #tpu.memory_space<vmem>>, vector<1x128x32xbf16>
    %74 = vector.shape_cast %73 : vector<1x128x32xbf16> to vector<128x32xbf16>
    %cst_46 = arith.constant dense<0.000000e+00> : vector<8x32xf32>
    %75 = tpu.matmul %27, %74, %cst_46 {dimension_numbers = #tpu.dot_dimension_numbers<[1], [0], [0], [1], [0, 0, 1, 1], [], []>} : vector<8x128xbf16>, vector<128x32xbf16>, vector<8x32xf32> -> vector<8x32xf32>
    %c1_47 = arith.constant 1 : index
    %c0_48 = arith.constant 0 : index
    %c0_49 = arith.constant 0 : index
    %76 = vector.load %arg5[%c1_47, %c0_48, %c0_49] : memref<4x1x32xf32, #tpu.memory_space<vmem>>, vector<1x1x32xf32>
    %77 = vector.shape_cast %76 : vector<1x1x32xf32> to vector<1x32xf32>
    %78 = vector.broadcast %77 : vector<1x32xf32> to vector<8x32xf32>
    %79 = arith.addf %75, %78 : vector<8x32xf32>
    %c1_50 = arith.constant 1 : index
    %c0_51 = arith.constant 0 : index
    %c0_52 = arith.constant 0 : index
    %80 = vector.load %arg6[%c1_50, %c0_51, %c0_52] : memref<4x128x32xbf16, #tpu.memory_space<vmem>>, vector<1x128x32xbf16>
    %81 = vector.shape_cast %80 : vector<1x128x32xbf16> to vector<128x32xbf16>
    %cst_53 = arith.constant dense<0.000000e+00> : vector<8x32xf32>
    %82 = tpu.matmul %3, %81, %cst_53 {dimension_numbers = #tpu.dot_dimension_numbers<[1], [0], [0], [1], [0, 0, 1, 1], [], []>} : vector<8x128xbf16>, vector<128x32xbf16>, vector<8x32xf32> -> vector<8x32xf32>
    %c1_54 = arith.constant 1 : index
    %c0_55 = arith.constant 0 : index
    %c0_56 = arith.constant 0 : index
    %83 = vector.load %arg7[%c1_54, %c0_55, %c0_56] : memref<4x1x32xf32, #tpu.memory_space<vmem>>, vector<1x1x32xf32>
    %84 = vector.shape_cast %83 : vector<1x1x32xf32> to vector<1x32xf32>
    %85 = vector.broadcast %84 : vector<1x32xf32> to vector<8x32xf32>
    %86 = arith.addf %82, %85 : vector<8x32xf32>
    %c1_57 = arith.constant 1 : index
    %c0_58 = arith.constant 0 : index
    %c0_59 = arith.constant 0 : index
    %87 = vector.load %arg8[%c1_57, %c0_58, %c0_59] : memref<4x128x32xbf16, #tpu.memory_space<vmem>>, vector<1x128x32xbf16>
    %88 = vector.shape_cast %87 : vector<1x128x32xbf16> to vector<128x32xbf16>
    %cst_60 = arith.constant dense<0.000000e+00> : vector<8x32xf32>
    %89 = tpu.matmul %3, %88, %cst_60 {dimension_numbers = #tpu.dot_dimension_numbers<[1], [0], [0], [1], [0, 0, 1, 1], [], []>} : vector<8x128xbf16>, vector<128x32xbf16>, vector<8x32xf32> -> vector<8x32xf32>
    %c1_61 = arith.constant 1 : index
    %c0_62 = arith.constant 0 : index
    %c0_63 = arith.constant 0 : index
    %90 = vector.load %arg9[%c1_61, %c0_62, %c0_63] : memref<4x1x32xf32, #tpu.memory_space<vmem>>, vector<1x1x32xf32>
    %91 = vector.shape_cast %90 : vector<1x1x32xf32> to vector<1x32xf32>
    %92 = vector.broadcast %91 : vector<1x32xf32> to vector<8x32xf32>
    %93 = arith.addf %89, %92 : vector<8x32xf32>
    %94 = arith.truncf %79 : vector<8x32xf32> to vector<8x32xbf16>
    %95 = arith.truncf %86 : vector<8x32xf32> to vector<8x32xbf16>
    "tpu.trace_start"() <{level = 10 : i32, message = "qd,kd->qk"}> : () -> ()
    %cst_64 = arith.constant dense<0.000000e+00> : vector<8x8xf32>
    %96 = tpu.matmul %94, %95, %cst_64 {dimension_numbers = #tpu.dot_dimension_numbers<[1], [1], [0], [0], [0, 0, 1, 0], [], []>} : vector<8x32xbf16>, vector<8x32xbf16>, vector<8x8xf32> -> vector<8x8xf32>
    "tpu.trace_stop"() : () -> ()
    %cst_65 = arith.constant 0.176776692 : f32
    %97 = vector.broadcast %cst_65 : f32 to vector<8x8xf32>
    %98 = arith.mulf %96, %97 : vector<8x8xf32>
    %cst_66 = arith.constant dense<0xFF800000> : vector<8xf32>
    %99 = vector.multi_reduction <maximumf>, %98, %cst_66 [1] : vector<8x8xf32> to vector<8xf32>
    %100 = vector.shape_cast %99 : vector<8xf32> to vector<8x1xf32>
    %101 = vector.broadcast %100 : vector<8x1xf32> to vector<8x8xf32>
    %102 = arith.subf %98, %101 : vector<8x8xf32>
    %103 = math.exp %102 : vector<8x8xf32>
    %cst_67 = arith.constant dense<0.000000e+00> : vector<8xf32>
    %104 = vector.multi_reduction <add>, %103, %cst_67 [1] : vector<8x8xf32> to vector<8xf32>
    %105 = vector.shape_cast %104 : vector<8xf32> to vector<8x1xf32>
    %106 = tpu.reciprocal %105 {approx = true} : vector<8x1xf32> -> vector<8x1xf32>
    %107 = vector.broadcast %106 : vector<8x1xf32> to vector<8x8xf32>
    %108 = arith.mulf %103, %107 : vector<8x8xf32>
    %109 = arith.truncf %108 : vector<8x8xf32> to vector<8x8xbf16>
    %110 = arith.truncf %93 : vector<8x32xf32> to vector<8x32xbf16>
    %cst_68 = arith.constant dense<0.000000e+00> : vector<8x32xf32>
    %111 = tpu.matmul %109, %110, %cst_68 {dimension_numbers = #tpu.dot_dimension_numbers<[1], [0], [0], [1], [0, 0, 1, 1], [], []>} : vector<8x8xbf16>, vector<8x32xbf16>, vector<8x32xf32> -> vector<8x32xf32>
    %112 = arith.truncf %111 : vector<8x32xf32> to vector<8x32xbf16>
    %c1_69 = arith.constant 1 : index
    %c0_70 = arith.constant 0 : index
    %c0_71 = arith.constant 0 : index
    %113 = vector.load %arg10[%c1_69, %c0_70, %c0_71] : memref<4x32x128xbf16, #tpu.memory_space<vmem>>, vector<1x32x128xbf16>
    %114 = vector.shape_cast %113 : vector<1x32x128xbf16> to vector<32x128xbf16>
    %cst_72 = arith.constant dense<0.000000e+00> : vector<8x128xf32>
    %115 = tpu.matmul %112, %114, %cst_72 {dimension_numbers = #tpu.dot_dimension_numbers<[1], [0], [0], [1], [0, 0, 1, 1], [], []>} : vector<8x32xbf16>, vector<32x128xbf16>, vector<8x128xf32> -> vector<8x128xf32>
    %116 = arith.addf %72, %115 : vector<8x128xf32>
    %c2 = arith.constant 2 : index
    %c0_73 = arith.constant 0 : index
    %c0_74 = arith.constant 0 : index
    %117 = vector.load %arg4[%c2, %c0_73, %c0_74] : memref<4x128x32xbf16, #tpu.memory_space<vmem>>, vector<1x128x32xbf16>
    %118 = vector.shape_cast %117 : vector<1x128x32xbf16> to vector<128x32xbf16>
    %cst_75 = arith.constant dense<0.000000e+00> : vector<8x32xf32>
    %119 = tpu.matmul %27, %118, %cst_75 {dimension_numbers = #tpu.dot_dimension_numbers<[1], [0], [0], [1], [0, 0, 1, 1], [], []>} : vector<8x128xbf16>, vector<128x32xbf16>, vector<8x32xf32> -> vector<8x32xf32>
    %c2_76 = arith.constant 2 : index
    %c0_77 = arith.constant 0 : index
    %c0_78 = arith.constant 0 : index
    %120 = vector.load %arg5[%c2_76, %c0_77, %c0_78] : memref<4x1x32xf32, #tpu.memory_space<vmem>>, vector<1x1x32xf32>
    %121 = vector.shape_cast %120 : vector<1x1x32xf32> to vector<1x32xf32>
    %122 = vector.broadcast %121 : vector<1x32xf32> to vector<8x32xf32>
    %123 = arith.addf %119, %122 : vector<8x32xf32>
    %c2_79 = arith.constant 2 : index
    %c0_80 = arith.constant 0 : index
    %c0_81 = arith.constant 0 : index
    %124 = vector.load %arg6[%c2_79, %c0_80, %c0_81] : memref<4x128x32xbf16, #tpu.memory_space<vmem>>, vector<1x128x32xbf16>
    %125 = vector.shape_cast %124 : vector<1x128x32xbf16> to vector<128x32xbf16>
    %cst_82 = arith.constant dense<0.000000e+00> : vector<8x32xf32>
    %126 = tpu.matmul %3, %125, %cst_82 {dimension_numbers = #tpu.dot_dimension_numbers<[1], [0], [0], [1], [0, 0, 1, 1], [], []>} : vector<8x128xbf16>, vector<128x32xbf16>, vector<8x32xf32> -> vector<8x32xf32>
    %c2_83 = arith.constant 2 : index
    %c0_84 = arith.constant 0 : index
    %c0_85 = arith.constant 0 : index
    %127 = vector.load %arg7[%c2_83, %c0_84, %c0_85] : memref<4x1x32xf32, #tpu.memory_space<vmem>>, vector<1x1x32xf32>
    %128 = vector.shape_cast %127 : vector<1x1x32xf32> to vector<1x32xf32>
    %129 = vector.broadcast %128 : vector<1x32xf32> to vector<8x32xf32>
    %130 = arith.addf %126, %129 : vector<8x32xf32>
    %c2_86 = arith.constant 2 : index
    %c0_87 = arith.constant 0 : index
    %c0_88 = arith.constant 0 : index
    %131 = vector.load %arg8[%c2_86, %c0_87, %c0_88] : memref<4x128x32xbf16, #tpu.memory_space<vmem>>, vector<1x128x32xbf16>
    %132 = vector.shape_cast %131 : vector<1x128x32xbf16> to vector<128x32xbf16>
    %cst_89 = arith.constant dense<0.000000e+00> : vector<8x32xf32>
    %133 = tpu.matmul %3, %132, %cst_89 {dimension_numbers = #tpu.dot_dimension_numbers<[1], [0], [0], [1], [0, 0, 1, 1], [], []>} : vector<8x128xbf16>, vector<128x32xbf16>, vector<8x32xf32> -> vector<8x32xf32>
    %c2_90 = arith.constant 2 : index
    %c0_91 = arith.constant 0 : index
    %c0_92 = arith.constant 0 : index
    %134 = vector.load %arg9[%c2_90, %c0_91, %c0_92] : memref<4x1x32xf32, #tpu.memory_space<vmem>>, vector<1x1x32xf32>
    %135 = vector.shape_cast %134 : vector<1x1x32xf32> to vector<1x32xf32>
    %136 = vector.broadcast %135 : vector<1x32xf32> to vector<8x32xf32>
    %137 = arith.addf %133, %136 : vector<8x32xf32>
    %138 = arith.truncf %123 : vector<8x32xf32> to vector<8x32xbf16>
    %139 = arith.truncf %130 : vector<8x32xf32> to vector<8x32xbf16>
    "tpu.trace_start"() <{level = 10 : i32, message = "qd,kd->qk"}> : () -> ()
    %cst_93 = arith.constant dense<0.000000e+00> : vector<8x8xf32>
    %140 = tpu.matmul %138, %139, %cst_93 {dimension_numbers = #tpu.dot_dimension_numbers<[1], [1], [0], [0], [0, 0, 1, 0], [], []>} : vector<8x32xbf16>, vector<8x32xbf16>, vector<8x8xf32> -> vector<8x8xf32>
    "tpu.trace_stop"() : () -> ()
    %cst_94 = arith.constant 0.176776692 : f32
    %141 = vector.broadcast %cst_94 : f32 to vector<8x8xf32>
    %142 = arith.mulf %140, %141 : vector<8x8xf32>
    %cst_95 = arith.constant dense<0xFF800000> : vector<8xf32>
    %143 = vector.multi_reduction <maximumf>, %142, %cst_95 [1] : vector<8x8xf32> to vector<8xf32>
    %144 = vector.shape_cast %143 : vector<8xf32> to vector<8x1xf32>
    %145 = vector.broadcast %144 : vector<8x1xf32> to vector<8x8xf32>
    %146 = arith.subf %142, %145 : vector<8x8xf32>
    %147 = math.exp %146 : vector<8x8xf32>
    %cst_96 = arith.constant dense<0.000000e+00> : vector<8xf32>
    %148 = vector.multi_reduction <add>, %147, %cst_96 [1] : vector<8x8xf32> to vector<8xf32>
    %149 = vector.shape_cast %148 : vector<8xf32> to vector<8x1xf32>
    %150 = tpu.reciprocal %149 {approx = true} : vector<8x1xf32> -> vector<8x1xf32>
    %151 = vector.broadcast %150 : vector<8x1xf32> to vector<8x8xf32>
    %152 = arith.mulf %147, %151 : vector<8x8xf32>
    %153 = arith.truncf %152 : vector<8x8xf32> to vector<8x8xbf16>
    %154 = arith.truncf %137 : vector<8x32xf32> to vector<8x32xbf16>
    %cst_97 = arith.constant dense<0.000000e+00> : vector<8x32xf32>
    %155 = tpu.matmul %153, %154, %cst_97 {dimension_numbers = #tpu.dot_dimension_numbers<[1], [0], [0], [1], [0, 0, 1, 1], [], []>} : vector<8x8xbf16>, vector<8x32xbf16>, vector<8x32xf32> -> vector<8x32xf32>
    %156 = arith.truncf %155 : vector<8x32xf32> to vector<8x32xbf16>
    %c2_98 = arith.constant 2 : index
    %c0_99 = arith.constant 0 : index
    %c0_100 = arith.constant 0 : index
    %157 = vector.load %arg10[%c2_98, %c0_99, %c0_100] : memref<4x32x128xbf16, #tpu.memory_space<vmem>>, vector<1x32x128xbf16>
    %158 = vector.shape_cast %157 : vector<1x32x128xbf16> to vector<32x128xbf16>
    %cst_101 = arith.constant dense<0.000000e+00> : vector<8x128xf32>
    %159 = tpu.matmul %156, %158, %cst_101 {dimension_numbers = #tpu.dot_dimension_numbers<[1], [0], [0], [1], [0, 0, 1, 1], [], []>} : vector<8x32xbf16>, vector<32x128xbf16>, vector<8x128xf32> -> vector<8x128xf32>
    %160 = arith.addf %116, %159 : vector<8x128xf32>
    %c3 = arith.constant 3 : index
    %c0_102 = arith.constant 0 : index
    %c0_103 = arith.constant 0 : index
    %161 = vector.load %arg4[%c3, %c0_102, %c0_103] : memref<4x128x32xbf16, #tpu.memory_space<vmem>>, vector<1x128x32xbf16>
    %162 = vector.shape_cast %161 : vector<1x128x32xbf16> to vector<128x32xbf16>
    %cst_104 = arith.constant dense<0.000000e+00> : vector<8x32xf32>
    %163 = tpu.matmul %27, %162, %cst_104 {dimension_numbers = #tpu.dot_dimension_numbers<[1], [0], [0], [1], [0, 0, 1, 1], [], []>} : vector<8x128xbf16>, vector<128x32xbf16>, vector<8x32xf32> -> vector<8x32xf32>
    %c3_105 = arith.constant 3 : index
    %c0_106 = arith.constant 0 : index
    %c0_107 = arith.constant 0 : index
    %164 = vector.load %arg5[%c3_105, %c0_106, %c0_107] : memref<4x1x32xf32, #tpu.memory_space<vmem>>, vector<1x1x32xf32>
    %165 = vector.shape_cast %164 : vector<1x1x32xf32> to vector<1x32xf32>
    %166 = vector.broadcast %165 : vector<1x32xf32> to vector<8x32xf32>
    %167 = arith.addf %163, %166 : vector<8x32xf32>
    %c3_108 = arith.constant 3 : index
    %c0_109 = arith.constant 0 : index
    %c0_110 = arith.constant 0 : index
    %168 = vector.load %arg6[%c3_108, %c0_109, %c0_110] : memref<4x128x32xbf16, #tpu.memory_space<vmem>>, vector<1x128x32xbf16>
    %169 = vector.shape_cast %168 : vector<1x128x32xbf16> to vector<128x32xbf16>
    %cst_111 = arith.constant dense<0.000000e+00> : vector<8x32xf32>
    %170 = tpu.matmul %3, %169, %cst_111 {dimension_numbers = #tpu.dot_dimension_numbers<[1], [0], [0], [1], [0, 0, 1, 1], [], []>} : vector<8x128xbf16>, vector<128x32xbf16>, vector<8x32xf32> -> vector<8x32xf32>
    %c3_112 = arith.constant 3 : index
    %c0_113 = arith.constant 0 : index
    %c0_114 = arith.constant 0 : index
    %171 = vector.load %arg7[%c3_112, %c0_113, %c0_114] : memref<4x1x32xf32, #tpu.memory_space<vmem>>, vector<1x1x32xf32>
    %172 = vector.shape_cast %171 : vector<1x1x32xf32> to vector<1x32xf32>
    %173 = vector.broadcast %172 : vector<1x32xf32> to vector<8x32xf32>
    %174 = arith.addf %170, %173 : vector<8x32xf32>
    %c3_115 = arith.constant 3 : index
    %c0_116 = arith.constant 0 : index
    %c0_117 = arith.constant 0 : index
    %175 = vector.load %arg8[%c3_115, %c0_116, %c0_117] : memref<4x128x32xbf16, #tpu.memory_space<vmem>>, vector<1x128x32xbf16>
    %176 = vector.shape_cast %175 : vector<1x128x32xbf16> to vector<128x32xbf16>
    %cst_118 = arith.constant dense<0.000000e+00> : vector<8x32xf32>
    %177 = tpu.matmul %3, %176, %cst_118 {dimension_numbers = #tpu.dot_dimension_numbers<[1], [0], [0], [1], [0, 0, 1, 1], [], []>} : vector<8x128xbf16>, vector<128x32xbf16>, vector<8x32xf32> -> vector<8x32xf32>
    %c3_119 = arith.constant 3 : index
    %c0_120 = arith.constant 0 : index
    %c0_121 = arith.constant 0 : index
    %178 = vector.load %arg9[%c3_119, %c0_120, %c0_121] : memref<4x1x32xf32, #tpu.memory_space<vmem>>, vector<1x1x32xf32>
    %179 = vector.shape_cast %178 : vector<1x1x32xf32> to vector<1x32xf32>
    %180 = vector.broadcast %179 : vector<1x32xf32> to vector<8x32xf32>
    %181 = arith.addf %177, %180 : vector<8x32xf32>
    %182 = arith.truncf %167 : vector<8x32xf32> to vector<8x32xbf16>
    %183 = arith.truncf %174 : vector<8x32xf32> to vector<8x32xbf16>
    "tpu.trace_start"() <{level = 10 : i32, message = "qd,kd->qk"}> : () -> ()
    %cst_122 = arith.constant dense<0.000000e+00> : vector<8x8xf32>
    %184 = tpu.matmul %182, %183, %cst_122 {dimension_numbers = #tpu.dot_dimension_numbers<[1], [1], [0], [0], [0, 0, 1, 0], [], []>} : vector<8x32xbf16>, vector<8x32xbf16>, vector<8x8xf32> -> vector<8x8xf32>
    "tpu.trace_stop"() : () -> ()
    %cst_123 = arith.constant 0.176776692 : f32
    %185 = vector.broadcast %cst_123 : f32 to vector<8x8xf32>
    %186 = arith.mulf %184, %185 : vector<8x8xf32>
    %cst_124 = arith.constant dense<0xFF800000> : vector<8xf32>
    %187 = vector.multi_reduction <maximumf>, %186, %cst_124 [1] : vector<8x8xf32> to vector<8xf32>
    %188 = vector.shape_cast %187 : vector<8xf32> to vector<8x1xf32>
    %189 = vector.broadcast %188 : vector<8x1xf32> to vector<8x8xf32>
    %190 = arith.subf %186, %189 : vector<8x8xf32>
    %191 = math.exp %190 : vector<8x8xf32>
    %cst_125 = arith.constant dense<0.000000e+00> : vector<8xf32>
    %192 = vector.multi_reduction <add>, %191, %cst_125 [1] : vector<8x8xf32> to vector<8xf32>
    %193 = vector.shape_cast %192 : vector<8xf32> to vector<8x1xf32>
    %194 = tpu.reciprocal %193 {approx = true} : vector<8x1xf32> -> vector<8x1xf32>
    %195 = vector.broadcast %194 : vector<8x1xf32> to vector<8x8xf32>
    %196 = arith.mulf %191, %195 : vector<8x8xf32>
    %197 = arith.truncf %196 : vector<8x8xf32> to vector<8x8xbf16>
    %198 = arith.truncf %181 : vector<8x32xf32> to vector<8x32xbf16>
    %cst_126 = arith.constant dense<0.000000e+00> : vector<8x32xf32>
    %199 = tpu.matmul %197, %198, %cst_126 {dimension_numbers = #tpu.dot_dimension_numbers<[1], [0], [0], [1], [0, 0, 1, 1], [], []>} : vector<8x8xbf16>, vector<8x32xbf16>, vector<8x32xf32> -> vector<8x32xf32>
    %200 = arith.truncf %199 : vector<8x32xf32> to vector<8x32xbf16>
    %c3_127 = arith.constant 3 : index
    %c0_128 = arith.constant 0 : index
    %c0_129 = arith.constant 0 : index
    %201 = vector.load %arg10[%c3_127, %c0_128, %c0_129] : memref<4x32x128xbf16, #tpu.memory_space<vmem>>, vector<1x32x128xbf16>
    %202 = vector.shape_cast %201 : vector<1x32x128xbf16> to vector<32x128xbf16>
    %cst_130 = arith.constant dense<0.000000e+00> : vector<8x128xf32>
    %203 = tpu.matmul %200, %202, %cst_130 {dimension_numbers = #tpu.dot_dimension_numbers<[1], [0], [0], [1], [0, 0, 1, 1], [], []>} : vector<8x32xbf16>, vector<32x128xbf16>, vector<8x128xf32> -> vector<8x128xf32>
    %204 = arith.addf %160, %203 : vector<8x128xf32>
    %c0_131 = arith.constant 0 : index
    %c0_132 = arith.constant 0 : index
    %205 = vector.load %arg11[%c0_131, %c0_132] : memref<1x128xf32, #tpu.memory_space<vmem>>, vector<1x128xf32>
    %206 = vector.broadcast %205 : vector<1x128xf32> to vector<8x128xf32>
    %207 = arith.addf %204, %206 : vector<8x128xf32>
    %c0_133 = arith.constant 0 : index
    %c0_134 = arith.constant 0 : index
    %208 = vector.load %arg14[%c0_133, %c0_134] : memref<1x128xf32, #tpu.memory_space<vmem>>, vector<1x128xf32>
    %c0_135 = arith.constant 0 : index
    %c0_136 = arith.constant 0 : index
    %209 = vector.load %arg15[%c0_135, %c0_136] : memref<1x128xf32, #tpu.memory_space<vmem>>, vector<1x128xf32>
    %cst_137 = arith.constant dense<0.000000e+00> : vector<8xf32>
    %210 = vector.multi_reduction <add>, %207, %cst_137 [1] : vector<8x128xf32> to vector<8xf32>
    %211 = vector.shape_cast %210 : vector<8xf32> to vector<8x1xf32>
    %cst_138 = arith.constant 1.280000e+02 : f32
    %212 = vector.broadcast %cst_138 : f32 to vector<8x1xf32>
    %213 = arith.divf %211, %212 : vector<8x1xf32>
    %214 = vector.broadcast %213 : vector<8x1xf32> to vector<8x128xf32>
    %215 = arith.subf %207, %214 : vector<8x128xf32>
    %216 = arith.mulf %215, %215 : vector<8x128xf32>
    %cst_139 = arith.constant dense<0.000000e+00> : vector<8xf32>
    %217 = vector.multi_reduction <add>, %216, %cst_139 [1] : vector<8x128xf32> to vector<8xf32>
    %218 = vector.shape_cast %217 : vector<8xf32> to vector<8x1xf32>
    %cst_140 = arith.constant 0.00787401571 : f32
    %219 = vector.broadcast %cst_140 : f32 to vector<8x1xf32>
    %220 = arith.mulf %218, %219 : vector<8x1xf32>
    %221 = math.sqrt %220 : vector<8x1xf32>
    %cst_141 = arith.constant 9.99999997E-7 : f32
    %222 = vector.broadcast %cst_141 : f32 to vector<8x1xf32>
    %223 = arith.addf %221, %222 : vector<8x1xf32>
    %224 = tpu.reciprocal %223 {approx = true} : vector<8x1xf32> -> vector<8x1xf32>
    %225 = vector.broadcast %224 : vector<8x1xf32> to vector<8x128xf32>
    %226 = arith.mulf %215, %225 : vector<8x128xf32>
    %227 = vector.broadcast %208 : vector<1x128xf32> to vector<8x128xf32>
    %228 = arith.mulf %227, %226 : vector<8x128xf32>
    %229 = vector.broadcast %209 : vector<1x128xf32> to vector<8x128xf32>
    %230 = arith.addf %228, %229 : vector<8x128xf32>
    %231 = arith.truncf %230 : vector<8x128xf32> to vector<8x128xbf16>
    %c0_142 = arith.constant 0 : index
    %c0_143 = arith.constant 0 : index
    %232 = vector.load %arg16[%c0_142, %c0_143] : memref<128x256xbf16, #tpu.memory_space<vmem>>, vector<128x256xbf16>
    %cst_144 = arith.constant dense<0.000000e+00> : vector<8x256xf32>
    %233 = tpu.matmul %231, %232, %cst_144 {dimension_numbers = #tpu.dot_dimension_numbers<[1], [0], [0], [1], [0, 0, 1, 1], [], []>} : vector<8x128xbf16>, vector<128x256xbf16>, vector<8x256xf32> -> vector<8x256xf32>
    %c0_145 = arith.constant 0 : index
    %c0_146 = arith.constant 0 : index
    %234 = vector.load %arg17[%c0_145, %c0_146] : memref<1x256xf32, #tpu.memory_space<vmem>>, vector<1x256xf32>
    %235 = vector.broadcast %234 : vector<1x256xf32> to vector<8x256xf32>
    %236 = arith.addf %233, %235 : vector<8x256xf32>
    %cst_147 = arith.constant 0.000000e+00 : f32
    %237 = vector.broadcast %cst_147 : f32 to vector<8x256xf32>
    %238 = arith.maximumf %236, %237 : vector<8x256xf32>
    %239 = arith.truncf %238 : vector<8x256xf32> to vector<8x256xbf16>
    %c0_148 = arith.constant 0 : index
    %c0_149 = arith.constant 0 : index
    %240 = vector.load %arg18[%c0_148, %c0_149] : memref<256x128xbf16, #tpu.memory_space<vmem>>, vector<256x128xbf16>
    %cst_150 = arith.constant dense<0.000000e+00> : vector<8x128xf32>
    %241 = tpu.matmul %239, %240, %cst_150 {dimension_numbers = #tpu.dot_dimension_numbers<[1], [0], [0], [1], [0, 0, 1, 1], [], []>} : vector<8x256xbf16>, vector<256x128xbf16>, vector<8x128xf32> -> vector<8x128xf32>
    %c0_151 = arith.constant 0 : index
    %c0_152 = arith.constant 0 : index
    %242 = vector.load %arg19[%c0_151, %c0_152] : memref<1x128xf32, #tpu.memory_space<vmem>>, vector<1x128xf32>
    %243 = vector.broadcast %242 : vector<1x128xf32> to vector<8x128xf32>
    %244 = arith.addf %241, %243 : vector<8x128xf32>
    %c0_153 = arith.constant 0 : index
    %c0_154 = arith.constant 0 : index
    %c0_155 = arith.constant 0 : index
    %245 = vector.load %arg20[%c0_153, %c0_154, %c0_155] : memref<1x8x128xf32, #tpu.memory_space<vmem>>, vector<1x8x128xf32>
    %246 = vector.shape_cast %245 : vector<1x8x128xf32> to vector<8x128xf32>
    %247 = vector.shape_cast %244 : vector<8x128xf32> to vector<1x8x128xf32>
    tpu.vector_store %arg20[%c0_153, %c0_154, %c0_155], %247 {strides = array<i32>} : memref<1x8x128xf32, #tpu.memory_space<vmem>>, vector<1x8x128xf32>,
    return
  }
  func.func @transform_0(%arg0: i32, %arg1: i32) -> (i32, i32, i32) {
    %c0_i32 = arith.constant 0 : i32
    %c0_i32_0 = arith.constant 0 : i32
    return %arg0, %arg1, %c0_i32 : i32, i32, i32
  }
  func.func @transform_1(%arg0: i32, %arg1: i32) -> (i32, i32, i32) {
    %c0_i32 = arith.constant 0 : i32
    %c0_i32_0 = arith.constant 0 : i32
    %c0_i32_1 = arith.constant 0 : i32
    return %arg0, %c0_i32, %c0_i32_0 : i32, i32, i32
  }
  func.func @transform_2(%arg0: i32, %arg1: i32) -> (i32, i32, i32) {
    %c0_i32 = arith.constant 0 : i32
    %c0_i32_0 = arith.constant 0 : i32
    %c0_i32_1 = arith.constant 0 : i32
    %c0_i32_2 = arith.constant 0 : i32
    return %c0_i32, %c0_i32_0, %c0_i32_1 : i32, i32, i32
  }
  func.func @transform_3(%arg0: i32, %arg1: i32) -> (i32, i32, i32) {
    %c0_i32 = arith.constant 0 : i32
    %c0_i32_0 = arith.constant 0 : i32
    %c0_i32_1 = arith.constant 0 : i32
    %c0_i32_2 = arith.constant 0 : i32
    return %c0_i32, %c0_i32_0, %c0_i32_1 : i32, i32, i32
  }
  func.func @transform_4(%arg0: i32, %arg1: i32) -> (i32, i32, i32) {
    %c0_i32 = arith.constant 0 : i32
    %c0_i32_0 = arith.constant 0 : i32
    %c0_i32_1 = arith.constant 0 : i32
    %c0_i32_2 = arith.constant 0 : i32
    return %c0_i32, %c0_i32_0, %c0_i32_1 : i32, i32, i32
  }
  func.func @transform_5(%arg0: i32, %arg1: i32) -> (i32, i32, i32) {
    %c0_i32 = arith.constant 0 : i32
    %c0_i32_0 = arith.constant 0 : i32
    %c0_i32_1 = arith.constant 0 : i32
    %c0_i32_2 = arith.constant 0 : i32
    return %c0_i32, %c0_i32_0, %c0_i32_1 : i32, i32, i32
  }
  func.func @transform_6(%arg0: i32, %arg1: i32) -> (i32, i32, i32) {
    %c0_i32 = arith.constant 0 : i32
    %c0_i32_0 = arith.constant 0 : i32
    %c0_i32_1 = arith.constant 0 : i32
    %c0_i32_2 = arith.constant 0 : i32
    return %c0_i32, %c0_i32_0, %c0_i32_1 : i32, i32, i32
  }
  func.func @transform_7(%arg0: i32, %arg1: i32) -> (i32, i32, i32) {
    %c0_i32 = arith.constant 0 : i32
    %c0_i32_0 = arith.constant 0 : i32
    %c0_i32_1 = arith.constant 0 : i32
    %c0_i32_2 = arith.constant 0 : i32
    return %c0_i32, %c0_i32_0, %c0_i32_1 : i32, i32, i32
  }
  func.func @transform_8(%arg0: i32, %arg1: i32) -> (i32, i32, i32) {
    %c0_i32 = arith.constant 0 : i32
    %c0_i32_0 = arith.constant 0 : i32
    %c0_i32_1 = arith.constant 0 : i32
    %c0_i32_2 = arith.constant 0 : i32
    return %c0_i32, %c0_i32_0, %c0_i32_1 : i32, i32, i32
  }
  func.func @transform_9(%arg0: i32, %arg1: i32) -> (i32, i32) {
    %c0_i32 = arith.constant 0 : i32
    %c0_i32_0 = arith.constant 0 : i32
    %c0_i32_1 = arith.constant 0 : i32
    return %c0_i32, %c0_i32_0 : i32, i32
  }
  func.func @transform_10(%arg0: i32, %arg1: i32) -> (i32, i32) {
    %c0_i32 = arith.constant 0 : i32
    %c0_i32_0 = arith.constant 0 : i32
    %c0_i32_1 = arith.constant 0 : i32
    return %c0_i32, %c0_i32_0 : i32, i32
  }
  func.func @transform_11(%arg0: i32, %arg1: i32) -> (i32, i32) {
    %c0_i32 = arith.constant 0 : i32
    %c0_i32_0 = arith.constant 0 : i32
    %c0_i32_1 = arith.constant 0 : i32
    return %c0_i32, %c0_i32_0 : i32, i32
  }
  func.func @transform_12(%arg0: i32, %arg1: i32) -> (i32, i32) {
    %c0_i32 = arith.constant 0 : i32
    %c0_i32_0 = arith.constant 0 : i32
    %c0_i32_1 = arith.constant 0 : i32
    return %c0_i32, %c0_i32_0 : i32, i32
  }
  func.func @transform_13(%arg0: i32, %arg1: i32) -> (i32, i32) {
    %c0_i32 = arith.constant 0 : i32
    %c0_i32_0 = arith.constant 0 : i32
    %c0_i32_1 = arith.constant 0 : i32
    return %c0_i32, %c0_i32_0 : i32, i32
  }
  func.func @transform_14(%arg0: i32, %arg1: i32) -> (i32, i32) {
    %c0_i32 = arith.constant 0 : i32
    %c0_i32_0 = arith.constant 0 : i32
    %c0_i32_1 = arith.constant 0 : i32
    return %c0_i32, %c0_i32_0 : i32, i32
  }
  func.func @transform_15(%arg0: i32, %arg1: i32) -> (i32, i32) {
    %c0_i32 = arith.constant 0 : i32
    %c0_i32_0 = arith.constant 0 : i32
    %c0_i32_1 = arith.constant 0 : i32
    return %c0_i32, %c0_i32_0 : i32, i32
  }
  func.func @transform_16(%arg0: i32, %arg1: i32) -> (i32, i32) {
    %c0_i32 = arith.constant 0 : i32
    %c0_i32_0 = arith.constant 0 : i32
    %c0_i32_1 = arith.constant 0 : i32
    return %c0_i32, %c0_i32_0 : i32, i32
  }
  func.func @transform_17(%arg0: i32, %arg1: i32) -> (i32, i32) {
    %c0_i32 = arith.constant 0 : i32
    %c0_i32_0 = arith.constant 0 : i32
    %c0_i32_1 = arith.constant 0 : i32
    return %c0_i32, %c0_i32_0 : i32, i32
  }
  func.func @transform_18(%arg0: i32, %arg1: i32) -> (i32, i32, i32) {
    %c0_i32 = arith.constant 0 : i32
    %c0_i32_0 = arith.constant 0 : i32
    return %arg0, %arg1, %c0_i32 : i32, i32, i32
  }
}

</mosaic_0001>

<bundles_post_ra>
// kernel: tpu_custom_call.1
= control target key start
LH: loop header
LB: loop body
LE: loop exit
PB: predicated region body
PF: predicated region fallthrough
CT: control target
= control target key end

     0   :  { %s4268_s0 = inlined_call_operand.vmem [shape: f32[2,8,128], index: 0, kind: input, shape index: {}]   ;;  %s4269_s1 = inlined_call_operand.vmem [shape: bf16[2,8,128], index: 1, kind: input, shape index: {}]   ;;  %s4270_s2 = inlined_call_operand.vmem [shape: bf16[4,128,32], index: 2, kind: input, shape index: {}]   ;;  %s4271_s3 = inlined_call_operand.vmem [shape: f32[4,1,32], index: 3, kind: input, shape index: {}]   ;;  %s4272_s4 = inlined_call_operand.vmem [shape: bf16[4,128,32], index: 4, kind: input, shape index: {}]   ;;  %s4273_s5 = inlined_call_operand.vmem [shape: f32[4,1,32], index: 5, kind: input, shape index: {}]   ;;  %s4274_s6 = inlined_call_operand.vmem [shape: bf16[4,128,32], index: 6, kind: input, shape index: {}]   ;;  %s4275_s7 = inlined_call_operand.vmem [shape: f32[4,1,32], index: 7, kind: input, shape index: {}]   ;;  %s4276_s8 = inlined_call_operand.vmem [shape: bf16[4,32,128], index: 8, kind: input, shape index: {}]   ;;  %s4277_s9 = inlined_call_operand.vmem [shape: f32[1,128], index: 9, kind: input, shape index: {}]   ;;  %s4278_s10 = inlined_call_operand.vmem [shape: f32[1,128], index: 10, kind: input, shape index: {}]   ;;  %s4279_s11 = inlined_call_operand.vmem [shape: f32[1,128], index: 11, kind: input, shape index: {}]   ;;  %s4280_s12 = inlined_call_operand.vmem [shape: f32[1,128], index: 12, kind: input, shape index: {}]   ;;  %s4281_s13 = inlined_call_operand.vmem [shape: f32[1,128], index: 13, kind: input, shape index: {}]   ;;  %s4282_s14 = inlined_call_operand.vmem [shape: bf16[128,256], index: 14, kind: input, shape index: {}]   ;;  %s4283_s15 = inlined_call_operand.vmem [shape: f32[1,256], index: 15, kind: input, shape index: {}]   ;;  %s4284_s16 = inlined_call_operand.vmem [shape: bf16[256,128], index: 16, kind: input, shape index: {}]   ;;  %s4285_s17 = inlined_call_operand.vmem [shape: f32[1,128], index: 17, kind: input, shape index: {}]   ;;  %s4286_s18 = inlined_call_operand.hbm [shape: f32[2,8,128], index: 18, kind: output, shape index: {}]  }
   0x1   :  { %4295 = sst [smem:[#allocation12_spill]] %s4268_s0 }
   0x2   :  { %4296 = sst [smem:[#allocation13_spill]] %s4269_s1 }
   0x3   :  { %4297 = sst [smem:[#allocation14_spill]] %s4270_s2 }
   0x4   :  { %4298 = sst [smem:[#allocation15_spill]] %s4271_s3 }
   0x5   :  { %23 = vsyncpa [#allocation3], 0 }
   0x6   :  { %25 = vsyncpa [#allocation3 + $0x1], 0  ;;  %s3578_s27 = smov 0   ;;  %s3580_s28 = smov 0  }
   0x7   :  { %s3582_s29 = smov 0   ;;  %s3584_s30 = smov 0  }
   0x8   :  { %s3586_s0 = smov 0   ;;  %s3588_s19 = smov 0  }
   0x9 LB: > { %4299 = sst [smem:[#allocation5_spill]] %s3460_s27  ;;  %s2433_s1 = sadd.s32 4294967295, %s3480_s19   ;;  %s3480_s19 = sphi %s3588_s19, %s31_s19   ;;  %s3476_s0 = sphi %s3586_s0, %s4318_s0   ;;  %s3472_s30 = sphi %s3584_s30, %s4317_s30   ;;  %s3468_s29 = sphi %s3582_s29, %s4316_s29   ;;  %s3464_s28 = sphi %s3580_s28, %s4320_s28   ;;  %s3460_s27 = sphi %s3578_s27, %s4319_s27  }
   0xa   : > { %4300 = sst [smem:[#allocation6_spill]] %s3468_s29  ;;  %s2434_s20 = sadd.s32 4294967294, %s3480_s19  }
   0xb   : > { %4301 = sst [smem:[#allocation7_spill]] %s3476_s0  ;;  %s43_s21 = sadd.s32 1, %s3476_s0 }
   0xc   : > { %4302 = sst [smem:[#allocation8_spill]] %s3480_s19  ;;  %s442_s22 = sadd.s32 1, %s3468_s29 }
   0xd   : > { %p45_p0 = scmp.ge.s32.totalorder %s43_s21, 2  ;;  %p452_p1 = scmp.ne.s32.totalorder %s3468_s29, %s3464_s28 }
   0xe   : > { %p453_p2 = scmp.eq.s32.totalorder %s2433_s1, 1  ;;  %p458_p3 = scmp.ne.s32.totalorder %s3464_s28, %s3460_s27 }
   0xf   : > { %s4322_s21 = smov (%p45_p0, %s43_s21), 0  ;;  %p459_p5 = scmp.eq.s32.totalorder %s2434_s20, 1 }
  0x10   : > { %4303 = sst [smem:[#allocation9_spill]] %s4322_s21  ;;  %p3618_p4 = por %p453_p2, %p452_p1 }
  0x11   : > { %s437_s23 = ssub.s32 %s3476_s0, %s4322_s21  ;;  %p2437_p6 = scmp.ge.s32.totalorder %s3480_s19, 1 }
  0x12   : > { %p440_p7 = scmp.eq.s32.totalorder %s437_s23, 0  ;;  %p3625_p8 = por %p459_p5, %p458_p3 }
  0x13   : > { %p542_p9 = scmp.lt.s32.totalorder %s3480_s19, 3 }
  0x14   : > { %s4305_s24 = scalar_select %p3625_p8, 1, 0 }
  0x15   : > { %s3631_s25 = scalar_select %p440_p7, %s3468_s29, %s442_s22  }
  0x16   : > { %4306 = sst [smem:[#allocation10_spill]] %s4305_s24  ;;  %p543_p10 = pnand %p2437_p6, %p542_p9 }
  0x17   : > { %4307 = sst [smem:[#allocation11_spill]] %s3631_s25  ;;  %p602_p11 = scmp.lt.s32.totalorder (!%p543_p10), %s3472_s30, 1 }
  0x18   : > { %546 = sbr.rel (%p543_p10) target bundleno = 3260 (0xcbc), region = 92  ;;  %s4308_s0 = sld [smem:[#allocation12_spill]] (!%p543_p10) }
  0x19   : > { %s4309_s24 = sld [smem:[#allocation13_spill]] (!%p543_p10)  ;;  %s599_s19 = sand.u32 (!%p543_p10), 1, %s3464_s28  }
  0x1a   : > { %s4311_s3 = sld [smem:[#allocation15_spill]] (!%p543_p10)  ;;  %s3163_s22 = sshll.u32 (!%p543_p10), %s3472_s30, 3 }
  0x1b   : > { %s2345_s29 = scalar_lea.hbm (!%p543_p10), %s4286_s18, %s3163_s22 }
  0x1c   : > { %s2349_s27 = sshll.u32 (!%p543_p10), %s2345_s29, 4  ;;  %s2350_s27 = int_to_ptr.hbm [resolvable:$true] %s2349_s27 }
  0x1d   : > { %s3635_s26 = scalar_select %p602_p11, %s3472_s30, 1  ;;  %v3482_v1 = vmov 128.0   ;;  %v3181_v2 = vld [vmem:[%s4272_s4 + $0x38] sm:$0xff]  ;;  %v3180_v3 = vld [vmem:[%s4272_s4 + $0x30] sm:$0xff]  ;;  %v3179_v5 = vld [vmem:[%s4272_s4 + $0x28] sm:$0xff]  ;;  %vm902_vm3 = vcmask 261120  }
  0x1e   : > { %3376 = vrcp.f32 %v3482_v1  ;;  %806 = vmatpush.bf16.msra.mxu1 %v3181_v2  ;;  %v3178_v7 = vld [vmem:[%s4272_s4 + $0x20] sm:$0xff]  ;;  %v3177_v9 = vld [vmem:[%s4272_s4 + $0x18] sm:$0xff]  ;;  %v3176_v11 = vld [vmem:[%s4272_s4 + $0x10] sm:$0xff]  ;;  %vm923_vm4 = vcmask 64512   ;;  %vm940_vm5 = vcmask 1043456   ;;  %s2334_s30 = scalar_lea.sflag [#allocation3], %s599_s19 }
  0x1f   : > { %s2439_s1 = sshll.u32 %s3635_s26, 3  ;;  %v3175_v13 = vld [vmem:[%s4272_s4 + $0x8] sm:$0xff]  ;;  %s2440_s20 = sshll.u32 %s3635_s26, 2  ;;  %v3174_v17 = vld [vmem:[%s4272_s4] sm:$0xff]  ;;  %v3215_v18 = vld [vmem:[%s4274_s6 + $0x78] sm:$0xff] }
  0x20   : > { %s608_s23 = scalar_lea.vmem %s4308_s0, %s2439_s1  ;;  %s612_s1 = scalar_lea.vmem %s4309_s24, %s2440_s20  ;;  %v3214_v22 = vld [vmem:[%s4274_s6 + $0x70] sm:$0xff]  ;;  %v3213_v23 = vld [vmem:[%s4274_s6 + $0x68] sm:$0xff]  ;;  %v3212_v24 = vld [vmem:[%s4274_s6 + $0x60] sm:$0xff] }
  0x21   : > { %v614_v0 = vld [vmem:[%s608_s23] sm:$0xff]  ;;  %v3211_v25 = vld [vmem:[%s4274_s6 + $0x58] sm:$0xff]  ;;  %v3210_v26 = vld [vmem:[%s4274_s6 + $0x50] sm:$0xff]  ;;  %s4310_s23 = sld [smem:[#allocation14_spill]]  ;;  %s2438_s20 = sshll.u32 %s599_s19, 3 }
  0x22   : > { %618 = vadd.xlane.f32.xlu0 %v614_v0  ;;  %807 = vmatpush.bf16.msra.mxu1 %v3180_v3  ;;  %v3677_v20 = vld [vmem:[%s612_s1] sm:$0xf]  ;;  %v3209_v27 = vld [vmem:[%s4274_s6 + $0x48] sm:$0xff]  ;;  %s601_s25 = scalar_lea.vmem [#allocation2], %s2438_s20  ;;  %s3422_s24 = scalar_lea.hbm %s4286_s18, 16 }
  0x23   : > { %v3208_v28 = vld [vmem:[%s4274_s6 + $0x40] sm:$0xff]  ;;  %s2347_s26 = sshll.u32 %s601_s25, 4  ;;  %s2348_s26 = int_to_ptr.vmem [resolvable:$true] %s2347_s26 }
  0x24   : > { %v3377_v4 = vpop.eup %3376  ;;  %v3358_v60 = vld [vmem:[%s4278_s10] ss:$0 sm:$0xff] }
  0x25   : > { %v621_v6 = vmul.f32 128.0, %v3377_v4  ;;  %vm625_vm0 = vweird.f32 %v3377_v4  ;;  %v3359_v63 = vld [vmem:[%s4279_s11] ss:$0 sm:$0xff] }
  0x26   : > { %808 = vmatpush.bf16.msra.mxu1 %v3179_v5  ;;  %v3360_v3 = vld [vmem:[%s4273_s5] ss:$0 sm:$0xff] }
  0x27   : > { %v622_v8 = vsub.f32 1.0, %v621_v6  ;;  %v3173_v29 = vld [vmem:[%s4310_s23 + $0x38] sm:$0xff]  ;;  %v3172_v31 = vld [vmem:[%s4310_s23 + $0x30] sm:$0xff]  ;;  %v3171_v33 = vld [vmem:[%s4310_s23 + $0x28] sm:$0xff] }
  0x28   : > { %v3225_v30 = vld [vmem:[%s4310_s23 + $0xb8] sm:$0xff]  ;;  %725 = vmatpush.bf16.msra.mxu0 %v3173_v29  ;;  %v3224_v32 = vld [vmem:[%s4310_s23 + $0xb0] sm:$0xff]  ;;  %v3223_v34 = vld [vmem:[%s4310_s23 + $0xa8] sm:$0xff] }
  0x29   : > { %v623_v10 = vmul.f32 %v3377_v4, %v622_v8  ;;  %v3170_v35 = vld [vmem:[%s4310_s23 + $0x20] sm:$0xff]  ;;  %v3169_v37 = vld [vmem:[%s4310_s23 + $0x18] sm:$0xff]  ;;  %v3168_v39 = vld [vmem:[%s4310_s23 + $0x10] sm:$0xff] }
  0x2a   : > { %809 = vmatpush.bf16.msra.mxu1 %v3178_v7  ;;  %v3222_v36 = vld [vmem:[%s4310_s23 + $0xa0] sm:$0xff]  ;;  %v3221_v38 = vld [vmem:[%s4310_s23 + $0x98] sm:$0xff]  ;;  %v3220_v40 = vld [vmem:[%s4310_s23 + $0x90] sm:$0xff] }
  0x2b   : > { %v624_v12 = vadd.f32 %v3377_v4, %v623_v10  ;;  %v3167_v41 = vld [vmem:[%s4310_s23 + $0x8] sm:$0xff]  ;;  %v3166_v45 = vld [vmem:[%s4310_s23] sm:$0xff] }
  0x2c   : > { %726 = vmatpush.bf16.msra.mxu0 %v3172_v31  ;;  %v3219_v42 = vld [vmem:[%s4310_s23 + $0x88] sm:$0xff]  ;;  %v3218_v46 = vld [vmem:[%s4310_s23 + $0x80] sm:$0xff]  ;;  %v3206_v31 = vld [vmem:[%s4272_s4 + $0x70] sm:$0xff] }
  0x2d   : > { %v3662_v14 = vsel %vm625_vm0, %v3377_v4, %v624_v12 }
  0x2e   : > { %810 = vmatpush.bf16.msra.mxu1 %v3177_v9  ;;  %v3362_v9 = vld [vmem:[%s4311_s3] ss:$0 sm:$0xff] }
  0x30   : > { %727 = vmatpush.bf16.msra.mxu0 %v3171_v33 }
  0x32   : > { %811 = vmatpush.bf16.msra.mxu1 %v3176_v11 }
  0x34   : > { %728 = vmatpush.bf16.msra.mxu0 %v3170_v35 }
  0x36   : > { %812 = vmatpush.bf16.msra.mxu1 %v3175_v13 }
  0x38   : > { %729 = vmatpush.bf16.msra.mxu0 %v3169_v37 }
  0x3a   : > { %813 = vmatpush.bf16.msra.mxu1 %v3174_v17  ;;  %v3189_v17 = vld [vmem:[%s4274_s6 + $0x38] sm:$0xff] }
  0x3b   : > { %887 = vmatpush.bf16.msra.mxu2 %v3189_v17 }
  0x3c   : > { %730 = vmatpush.bf16.msra.mxu0 %v3168_v39  ;;  %v3364_v39 = vld [vmem:[%s4275_s7] ss:$0 sm:$0xff] }
  0x3d   : > { %814 = vmatmul.bf16.vlgmr.msra.gmra.mxu1 %v3677_v20 }
  0x3e   : > { %1198 = vmatpush.bf16.msrb.mxu1 %v3215_v18  ;;  %v3188_v18 = vld [vmem:[%s4274_s6 + $0x30] sm:$0xff] }
  0x3f   : > { %888 = vmatpush.bf16.msra.mxu2 %v3188_v18 }
  0x40   : > { %731 = vmatpush.bf16.msra.mxu0 %v3167_v41 }
  0x42   : > { %1199 = vmatpush.bf16.msrb.mxu1 %v3214_v22  ;;  %v3185_v22 = vld [vmem:[%s4274_s6 + $0x18] sm:$0xff] }
  0x44   : > { %732 = vmatpush.bf16.msra.mxu0 %v3166_v45 }
  0x46   : > { %1200 = vmatpush.bf16.msrb.mxu1 %v3213_v23  ;;  %v3184_v23 = vld [vmem:[%s4274_s6 + $0x10] sm:$0xff] }
  0x4a   : > { %1201 = vmatpush.bf16.msrb.mxu1 %v3212_v24  ;;  %v3183_v24 = vld [vmem:[%s4274_s6 + $0x8] sm:$0xff] }
  0x4e   : > { %1202 = vmatpush.bf16.msrb.mxu1 %v3211_v25 }
  0x52   : > { %1203 = vmatpush.bf16.msrb.mxu1 %v3210_v26 }
  0x56   : > { %1204 = vmatpush.bf16.msrb.mxu1 %v3209_v27  ;;  %v3182_v27 = vld [vmem:[%s4274_s6] sm:$0xff] }
  0x5a   : > { %1205 = vmatpush.bf16.msrb.mxu1 %v3208_v28 }
  0x5d   : > { %1206 = vmatmul.bf16.vlgmr.msrb.gmra.mxu1 %v3677_v20 }
  0x5e   : > { %1397 = vmatpush.bf16.msra.mxu1 %v3225_v30  ;;  %v3207_v30 = vld [vmem:[%s4272_s4 + $0x78] sm:$0xff] }
  0x5f   : > { %1115 = vmatpush.bf16.msrb.mxu0 %v3207_v30  ;;  %v3230_v30 = vld [vmem:[%s4272_s4 + $0xa0] sm:$0xff] }
  0x62   : > { %1398 = vmatpush.bf16.msra.mxu1 %v3224_v32  ;;  %v3205_v32 = vld [vmem:[%s4272_s4 + $0x68] sm:$0xff] }
  0x63   : > { %1116 = vmatpush.bf16.msrb.mxu0 %v3206_v31  ;;  %v3229_v31 = vld [vmem:[%s4272_s4 + $0x98] sm:$0xff] }
  0x66   : > { %1399 = vmatpush.bf16.msra.mxu1 %v3223_v34 }
  0x67   : > { %1117 = vmatpush.bf16.msrb.mxu0 %v3205_v32 }
  0x6a   : > { %1400 = vmatpush.bf16.msra.mxu1 %v3222_v36  ;;  %v3204_v36 = vld [vmem:[%s4272_s4 + $0x60] sm:$0xff] }
  0x6b   : > { %1118 = vmatpush.bf16.msrb.mxu0 %v3204_v36 }
  0x6e   : > { %1401 = vmatpush.bf16.msra.mxu1 %v3221_v38 }
  0x72   : > { %1402 = vmatpush.bf16.msra.mxu1 %v3220_v40 }
  0x76   : > { %1403 = vmatpush.bf16.msra.mxu1 %v3219_v42 }
  0x7a   : > { %1404 = vmatpush.bf16.msra.mxu1 %v3218_v46  ;;  %v3198_v46 = vld [vmem:[%s4310_s23 + $0x70] sm:$0xff] }
  0x95   : > { %v619_v15 = vpop.xlane.xlu0 %618 }
  0x96   : > { %v627_v16 = vmul.f32 %v3662_v14, %v619_v15 }
  0x98   : > { %v3675_v19 = vsub.f32 %v614_v0, %v627_v16 }
  0x9a   : > { %v629_v21 = vmul.f32 %v3675_v19, %v3675_v19 }
  0x9c   : > { %630 = vadd.xlane.f32.xlu0 %v629_v21  ;;  %v3186_v21 = vld [vmem:[%s4274_s6 + $0x20] sm:$0xff] }
  0xba   : > { %v815_v49 = vpop.f32.mrf.mxu1 }
  0xbb   : > { %v816_v4 = vadd.f32 %v3360_v3, %v815_v49  ;;  %v3202_v49 = vld [vmem:[%s4272_s4 + $0x50] sm:$0xff]  ;;  %v3365_v3 = vld [vmem:[%s4273_s5 + $0x1] ss:$0 sm:$0xff] }
  0xbd   : > { %v901_v5 = vpack.c.bf16 %v816_v4, %v816_v4 }
  0xbf   : > { %v907_v6 = vsel %vm902_vm3, %v901_v5, 0 }
  0xc0   : > { %916 = vmatpush.bf16.xpose.msra.mxu3 %v907_v6 }
  0xc2   : > { %v817_v54 = vpop.f32.mrf.mxu1 }
  0xc3   : > { %v3194_v54 = vld [vmem:[%s4310_s23 + $0x50] sm:$0xff] }
  0xda   : > { %v3767_v7 = vpop.f32.mrf.mxu1 }
  0xe2   : > { %v1209_v8 = vpop.f32.mrf.mxu1 }
 0x10f   : > { %v631_v43 = vpop.xlane.xlu0 %630 }
 0x110   : > { %v632_v44 = vmul.f32 0.007874016, %v631_v43  ;;  %v3199_v43 = vld [vmem:[%s4310_s23 + $0x78] sm:$0xff] }
 0x112   : > { %3378 = vrsqrt.f32 %v632_v44  ;;  %vm640_vm1 = vcmp.eq.f32.partialorder %v632_v44, inf  ;;  %v643_v56 = vand.u32 2147483648, %v632_v44  ;;  %vm642_vm2 = vcmp.eq.f32.partialorder %v632_v44, 0.0 }
 0x118   : > { %v3379_v47 = vpop.eup %3378 }
 0x119   : > { %v634_v48 = vmul.f32 %v3379_v47, %v632_v44 }
 0x11b   : > { %v635_v50 = vmul.f32 %v3379_v47, %v634_v48  ;;  %v3197_v48 = vld [vmem:[%s4310_s23 + $0x68] sm:$0xff] }
 0x11d   : > { %v636_v51 = vmul.f32 0.5, %v635_v50  ;;  %v3196_v50 = vld [vmem:[%s4310_s23 + $0x60] sm:$0xff] }
 0x11f   : > { %v637_v52 = vsub.f32 1.5, %v636_v51  ;;  %v3201_v51 = vld [vmem:[%s4272_s4 + $0x48] sm:$0xff] }
 0x121   : > { %v638_v53 = vmul.f32 %v3379_v47, %v637_v52  ;;  %v3203_v47 = vld [vmem:[%s4272_s4 + $0x58] sm:$0xff] }
 0x122   : > { %1119 = vmatpush.bf16.msrb.mxu0 %v3203_v47  ;;  %v3195_v52 = vld [vmem:[%s4310_s23 + $0x58] sm:$0xff]  ;;  %v3249_v47 = vld [vmem:[%s4310_s23 + $0xe8] sm:$0xff] }
 0x123   : > { %v639_v55 = vmul.f32 %v638_v53, %v632_v44  ;;  %v3200_v53 = vld [vmem:[%s4272_s4 + $0x40] sm:$0xff] }
 0x125   : > { %v641_v57 = vsel %vm640_vm1, %v632_v44, %v639_v55  ;;  %v3193_v55 = vld [vmem:[%s4310_s23 + $0x48] sm:$0xff] }
 0x126   : > { %v644_v58 = vsel %vm642_vm2, %v643_v56, %v641_v57  ;;  %1120 = vmatpush.bf16.msrb.mxu0 %v3202_v49  ;;  %v3192_v56 = vld [vmem:[%s4310_s23 + $0x40] sm:$0xff]  ;;  %v3191_v57 = vld [vmem:[%s4276_s8 + $0x8] sm:$0xff]  ;;  %v3247_v49 = vld [vmem:[%s4310_s23 + $0xd8] sm:$0xff] }
 0x127   : > { %v645_v59 = vadd.f32 1e-06, %v644_v58 }
 0x129   : > { %3380 = vrcp.f32 %v645_v59 }
 0x12a   : > { %1121 = vmatpush.bf16.msrb.mxu0 %v3201_v51  ;;  %v3245_v51 = vld [vmem:[%s4310_s23 + $0xc8] sm:$0xff] }
 0x12e   : > { %1122 = vmatpush.bf16.msrb.mxu0 %v3200_v53  ;;  %v3216_v53 = vld [vmem:[%s4276_s8 + $0x10] sm:$0xff] }
 0x12f   : > { %v3381_v61 = vpop.eup %3380 }
 0x130   : > { %v647_v62 = vmul.f32 %v3381_v61, %v3675_v19  ;;  %v3187_v19 = vld [vmem:[%s4274_s6 + $0x28] sm:$0xff] }
 0x131   : > { %889 = vmatpush.bf16.msra.mxu2 %v3187_v19 }
 0x132   : > { %v651_v0 = vmul.f32 %v3358_v60, %v647_v62  ;;  %v3361_v62 = vld [vmem:[%s4275_s7 + $0x1] ss:$0 sm:$0xff] }
 0x134   : > { %v655_v1 = vadd.f32 %v3359_v63, %v651_v0  ;;  %v3190_v63 = vld [vmem:[%s4276_s8] sm:$0xff]  ;;  %v1208_v0 = vadd.f32 %v3361_v62, %v3767_v7 }
 0x135   : > { %890 = vmatpush.bf16.msra.mxu2 %v3186_v21 }
 0x136   : > { %v3759_v2 = vpack.c.bf16 %v655_v1, %v655_v1  ;;  %v1245_v4 = vpack.c.bf16 %v1208_v0, %v1208_v0 }
 0x138   : > { %733 = vmatmul.bf16.vlgmr.msra.gmra.mxu0 %v3759_v2  ;;  %1405 = vmatmul.bf16.vlgmr.msra.gmra.mxu1 %v3759_v2  ;;  %v1250_v8 = vsel %vm940_vm5, %v1245_v4, 0  ;;  %v3241_v4 = vld [vmem:[%s4274_s6 + $0xb8] sm:$0xff] }
 0x139   : > { %891 = vmatpush.bf16.msra.mxu2 %v3185_v22  ;;  %1320 = vmatpush.bf16.msra.mxu0 %v3191_v57  ;;  %v3367_v57 = vld [vmem:[%s4273_s5 + $0x2] ss:$0 sm:$0xff] }
 0x13d   : > { %892 = vmatpush.bf16.msra.mxu2 %v3184_v23  ;;  %1321 = vmatpush.bf16.msra.mxu0 %v3190_v63 }
 0x141   : > { %893 = vmatpush.bf16.msra.mxu2 %v3183_v24 }
 0x145   : > { %894 = vmatpush.bf16.msra.mxu2 %v3182_v27  ;;  %v3233_v27 = vld [vmem:[%s4272_s4 + $0xb8] sm:$0xff] }
 0x148   : > { %895 = vmatmul.bf16.vlgmr.msra.gmra.mxu2 %v3677_v20  ;;  %1123 = vmatmul.bf16.vlgmr.msrb.gmra.mxu0 %v3677_v20 }
 0x1b5   : > { %v734_v10 = vpop.f32.mrf.mxu0  ;;  %v3772_v11 = vpop.f32.mrf.mxu1 }
 0x1b6   : > { %v735_v12 = vadd.f32 %v3362_v9, %v734_v10 }
 0x1b8   : > { %v900_v13 = vpack.c.bf16 %v735_v12, %v735_v12 }
 0x1ba   : > { %2537 = vmatmul.msk.bf16.vlgmr.msra.gmra.mxu3 %vm902_vm3, %v900_v13 }
 0x1bd   : > { %v736_v15 = vpop.f32.mrf.mxu0  ;;  %v1408_v16 = vpop.f32.mrf.mxu1 }
 0x1be   : > { %v3366_v15 = vld [vmem:[%s4311_s3 + $0x1] ss:$0 sm:$0xff] }
 0x1c5   : > { %v1124_v1 = vpop.f32.mrf.mxu0 }
 0x1c6   : > { %v1125_v5 = vadd.f32 %v3365_v3, %v1124_v1 }
 0x1c8   : > { %v1212_v6 = vpack.c.bf16 %v1125_v5, %v1125_v5  ;;  %v3240_v5 = vld [vmem:[%s4274_s6 + $0xb0] sm:$0xff] }
 0x1ca   : > { %v1217_v10 = vsel %vm902_vm3, %v1212_v6, 0 }
 0x1cb   : > { %v896_v40 = vpop.f32.mrf.mxu2  ;;  %1226 = vmatpush.bf16.xpose.msrb.mxu2 %v1217_v10  ;;  %v3237_v10 = vld [vmem:[%s4274_s6 + $0x98] sm:$0xff] }
 0x1cc   : > { %v897_v41 = vadd.f32 %v3364_v39, %v896_v40  ;;  %v3226_v39 = vld [vmem:[%s4272_s4 + $0x80] sm:$0xff] }
 0x1cd   : > { %v1126_v9 = vpop.f32.mrf.mxu0 }
 0x1ce   : > { %v936_v42 = vpack.c.bf16 %v897_v41, %v897_v41 }
 0x1d0   : > { %v942_v44 = vsel %vm940_vm5, %v936_v42, 0 }
 0x1d1   : > { %951 = vmatpush.bf16.msrb.mxu3 %v942_v44 }
 0x1d3   : > { %v898_v45 = vpop.f32.mrf.mxu2  ;;  %1259 = vmatpush.bf16.msra.mxu2 %v1250_v8  ;;  %v3238_v8 = vld [vmem:[%s4274_s6 + $0xa0] sm:$0xff] }
 0x1d4   : > { %v3217_v45 = vld [vmem:[%s4276_s8 + $0x18] sm:$0xff] }
 0x1d5   : > { %1032 = vmatpush.bf16.msra.mxu3 %v3199_v43  ;;  %v3251_v43 = vld [vmem:[%s4310_s23 + $0xf8] sm:$0xff] }
 0x1d9   : > { %1033 = vmatpush.bf16.msra.mxu3 %v3198_v46  ;;  %v3250_v46 = vld [vmem:[%s4310_s23 + $0xf0] sm:$0xff] }
 0x1dd   : > { %1034 = vmatpush.bf16.msra.mxu3 %v3197_v48  ;;  %v3248_v48 = vld [vmem:[%s4310_s23 + $0xe0] sm:$0xff] }
 0x1e1   : > { %1035 = vmatpush.bf16.msra.mxu3 %v3196_v50  ;;  %v3246_v50 = vld [vmem:[%s4310_s23 + $0xd0] sm:$0xff] }
 0x1e5   : > { %1036 = vmatpush.bf16.msra.mxu3 %v3195_v52  ;;  %v3244_v52 = vld [vmem:[%s4310_s23 + $0xc0] sm:$0xff] }
 0x1e9   : > { %1037 = vmatpush.bf16.msra.mxu3 %v3194_v54 }
 0x1ed   : > { %1038 = vmatpush.bf16.msra.mxu3 %v3193_v55 }
 0x1f1   : > { %1039 = vmatpush.bf16.msra.mxu3 %v3192_v56 }
 0x23d   : > { %v918_v25 = vpop.f32.mrf.mxu3 }
 0x23e   : > { %v922_v26 = vmul.f32 0.17677669, %v918_v25 }
 0x240   : > { %v924_v28 = vsel %vm923_vm4, %v922_v26, -inf }
 0x241   : > { %925 = vmax.xlane.f32.xlu1 %v924_v28  ;;  %v3232_v28 = vld [vmem:[%s4272_s4 + $0xb0] sm:$0xff] }
 0x245   : > { %v920_v29 = vpop.f32.mrf.mxu3 }
 0x246   : > { %v3231_v29 = vld [vmem:[%s4272_s4 + $0xa8] sm:$0xff] }
 0x2b4   : > { %v926_v33 = vpop.xlane.xlu1 %925 }
 0x2b5   : > { %v927_v34 = vsub.f32 %v922_v26, %v926_v33 }
 0x2b7   : > { %v928_v35 = vmul.f32 1.442695, %v927_v34 }
 0x2b9   : > { %3382 = vpow2.f32 %v928_v35 }
 0x2bf   : > { %v3383_v37 = vpop.eup %3382 }
 0x2c0   : > { %v930_v38 = vsel %vm923_vm4, %v3383_v37, 0.0 }
 0x2c1   : > { %931 = vadd.xlane.f32.xlu1 %v930_v38  ;;  %v3227_v38 = vld [vmem:[%s4272_s4 + $0x88] sm:$0xff] }
 0x334   : > { %v932_v58 = vpop.xlane.xlu1 %931 }
 0x335   : > { %3384 = vrcp.f32 %v932_v58 }
 0x33b   : > { %v3385_v59 = vpop.eup %3384 }
 0x33c   : > { %v934_v60 = vmul.f32 %v3385_v59, %v3383_v37  ;;  %v3228_v37 = vld [vmem:[%s4272_s4 + $0x90] sm:$0xff] }
 0x33e   : > { %v935_v61 = vpack.c.bf16 %v934_v60, %v934_v60 }
 0x340   : > { %2538 = vmatmul.msk.bf16.vlgmr.msrb.gmra.mxu3 %vm923_vm4, %v935_v61 }
 0x341   : > { %1292 = vmatpush.bf16.msrb.mxu3 %v3217_v45  ;;  %v3370_v45 = vld [vmem:[%s4273_s5 + $0x3] ss:$0 sm:$0xff] }
 0x345   : > { %1293 = vmatpush.bf16.msrb.mxu3 %v3216_v53 }
 0x350   : > { %1040 = vmatmul.bf16.vlgmr.msra.gmra.mxu3 %v3759_v2 }
 0x351   : > { %1563 = vmatpush.bf16.msra.mxu3 %v3241_v4 }
 0x355   : > { %1564 = vmatpush.bf16.msra.mxu3 %v3240_v5 }
 0x3c3   : > { %v953_v12 = vpop.f32.mrf.mxu3 }
 0x3c4   : > { %v957_v13 = vpack.c.bf16 %v953_v12, %v953_v12  ;;  %v3236_v12 = vld [vmem:[%s4274_s6 + $0x90] sm:$0xff] }
 0x3c6   : > { %2709 = vmatmul.msk.bf16.vlgmr.msra.gmra.mxu0 %vm902_vm3, %v957_v13  ;;  %v3235_v13 = vld [vmem:[%s4274_s6 + $0x88] sm:$0xff] }
 0x3cb   : > { %v955_v7 = vpop.f32.mrf.mxu3 }
 0x3d3   : > { %v1041_v16 = vpop.f32.mrf.mxu3 }
 0x3d4   : > { %v1042_v17 = vadd.f32 %v3366_v15, %v1041_v16  ;;  %v3234_v16 = vld [vmem:[%s4274_s6 + $0x80] sm:$0xff] }
 0x3d6   : > { %v1211_v18 = vpack.c.bf16 %v1042_v17, %v1042_v17 }
 0x3d8   : > { %2686 = vmatmul.msk.bf16.vlgmr.msrb.gmra.mxu2 %vm902_vm3, %v1211_v18 }
 0x3d9   : > { %1480 = vmatpush.bf16.msrb.mxu2 %v3233_v27 }
 0x3db   : > { %v1043_v19 = vpop.f32.mrf.mxu3 }
 0x3dc   : > { %v3259_v19 = vld [vmem:[%s4272_s4 + $0xf8] sm:$0xff] }
 0x3dd   : > { %1481 = vmatpush.bf16.msrb.mxu2 %v3232_v28 }
 0x3e1   : > { %1482 = vmatpush.bf16.msrb.mxu2 %v3231_v29 }
 0x3e5   : > { %1483 = vmatpush.bf16.msrb.mxu2 %v3230_v30  ;;  %v3253_v30 = vld [vmem:[%s4272_s4 + $0xc8] sm:$0xff] }
 0x3e9   : > { %1484 = vmatpush.bf16.msrb.mxu2 %v3229_v31 }
 0x3ed   : > { %1485 = vmatpush.bf16.msrb.mxu2 %v3228_v37 }
 0x3f1   : > { %1486 = vmatpush.bf16.msrb.mxu2 %v3227_v38 }
 0x3f5   : > { %1487 = vmatpush.bf16.msrb.mxu2 %v3226_v39  ;;  %v3252_v39 = vld [vmem:[%s4272_s4 + $0xc0] sm:$0xff] }
 0x443   : > { %v3877_v21 = vpop.f32.mrf.mxu0 }
 0x44b   : > { %v1325_v22 = vpop.f32.mrf.mxu0 }
 0x44c   : > { %v3258_v22 = vld [vmem:[%s4272_s4 + $0xf0] sm:$0xff] }
 0x45b   : > { %v1228_v23 = vpop.f32.mrf.mxu2 }
 0x45c   : > { %v1232_v24 = vmul.f32 0.17677669, %v1228_v23  ;;  %v3257_v23 = vld [vmem:[%s4272_s4 + $0xe8] sm:$0xff] }
 0x45e   : > { %v1233_v25 = vsel %vm923_vm4, %v1232_v24, -inf }
 0x45f   : > { %1234 = vmax.xlane.f32.xlu2 %v1233_v25  ;;  %v3255_v25 = vld [vmem:[%s4272_s4 + $0xd8] sm:$0xff] }
 0x463   : > { %v1230_v26 = vpop.f32.mrf.mxu2 }
 0x464   : > { %v3254_v26 = vld [vmem:[%s4272_s4 + $0xd0] sm:$0xff] }
 0x4d2   : > { %v1235_v32 = vpop.xlane.xlu2 %1234 }
 0x4d3   : > { %v1236_v33 = vsub.f32 %v1232_v24, %v1235_v32  ;;  %v3256_v24 = vld [vmem:[%s4272_s4 + $0xe0] sm:$0xff] }
 0x4d5   : > { %v1237_v34 = vmul.f32 1.442695, %v1236_v33  ;;  %v3369_v33 = vld [vmem:[%s4275_s7 + $0x2] ss:$0 sm:$0xff] }
 0x4d7   : > { %3386 = vpow2.f32 %v1237_v34 }
 0x4dd   : > { %v3387_v35 = vpop.eup %3386 }
 0x4de   : > { %v1239_v36 = vsel %vm923_vm4, %v3387_v35, 0.0 }
 0x4df   : > { %1240 = vadd.xlane.f32.xlu2 %v1239_v36 }
 0x552   : > { %v1241_v40 = vpop.xlane.xlu2 %1240 }
 0x553   : > { %3388 = vrcp.f32 %v1241_v40  ;;  %v3243_v40 = vld [vmem:[%s4276_s8 + $0x28] sm:$0xff] }
 0x554   : > { %1657 = vmatpush.bf16.msrb.mxu1 %v3243_v40  ;;  %v3092_v40 = vld [vmem:[%s4282_s14 + $0x70] sm:$0xf] }
 0x559   : > { %v3389_v41 = vpop.eup %3388 }
 0x55a   : > { %v1243_v42 = vmul.f32 %v3389_v41, %v3387_v35 }
 0x55c   : > { %v1244_v44 = vpack.c.bf16 %v1243_v42, %v1243_v42 }
 0x55e   : > { %2687 = vmatmul.msk.bf16.vlgmr.msra.gmra.mxu2 %vm923_vm4, %v1244_v44 }
 0x55f   : > { %1735 = vmatpush.bf16.msra.mxu2 %v3251_v43 }
 0x563   : > { %1736 = vmatpush.bf16.msra.mxu2 %v3250_v46 }
 0x567   : > { %1737 = vmatpush.bf16.msra.mxu2 %v3249_v47  ;;  %v3242_v47 = vld [vmem:[%s4276_s8 + $0x20] sm:$0xff] }
 0x568   : > { %1658 = vmatpush.bf16.msrb.mxu1 %v3242_v47  ;;  %v3282_v47 = vld [vmem:[%s4282_s14 + $0x64] sm:$0xf] }
 0x56b   : > { %1738 = vmatpush.bf16.msra.mxu2 %v3248_v48 }
 0x56e   : > { %1488 = vmatmul.bf16.vlgmr.msrb.gmra.mxu2 %v3677_v20 }
 0x56f   : > { %1739 = vmatpush.bf16.msra.mxu2 %v3247_v49 }
 0x573   : > { %1740 = vmatpush.bf16.msra.mxu2 %v3246_v50 }
 0x577   : > { %1741 = vmatpush.bf16.msra.mxu2 %v3245_v51 }
 0x57b   : > { %1742 = vmatpush.bf16.msra.mxu2 %v3244_v52 }
 0x57e   : > { %1743 = vmatmul.bf16.vlgmr.msra.gmra.mxu2 %v3759_v2  ;;  %v3363_v2 = vld [vmem:[%s4311_s3 + $0x2] ss:$0 sm:$0xff] }
 0x57f   : > { %v1407_v62 = vadd.f32 %v3363_v2, %v3772_v11  ;;  %v3239_v11 = vld [vmem:[%s4274_s6 + $0xa8] sm:$0xff] }
 0x580   : > { %1565 = vmatpush.bf16.msra.mxu3 %v3239_v11  ;;  %v3265_v2 = vld [vmem:[%s4274_s6 + $0xe8] sm:$0xff] }
 0x581   : > { %v1576_v0 = vpack.c.bf16 %v1407_v62, %v1407_v62 }
 0x584   : > { %1566 = vmatpush.bf16.msra.mxu3 %v3238_v8 }
 0x588   : > { %1567 = vmatpush.bf16.msra.mxu3 %v3237_v10 }
 0x58c   : > { %1568 = vmatpush.bf16.msra.mxu3 %v3236_v12 }
 0x590   : > { %1569 = vmatpush.bf16.msra.mxu3 %v3235_v13 }
 0x594   : > { %1570 = vmatpush.bf16.msra.mxu3 %v3234_v16 }
 0x5e1   : > { %v1261_v54 = vpop.f32.mrf.mxu2 }
 0x5e2   : > { %v1265_v55 = vpack.c.bf16 %v1261_v54, %v1261_v54 }
 0x5e4   : > { %2700 = vmatmul.msk.bf16.vlgmr.msrb.gmra.mxu3 %vm902_vm3, %v1265_v55  ;;  %v3368_v55 = vld [vmem:[%s4311_s3 + $0x3] ss:$0 sm:$0xff]  ;;  %s3416_s3 = sshra.s32 %s2350_s27, 4  ;;  %s3417_s3 = int_to_ptr.hbm [resolvable:$true] %s3416_s3 }
 0x5e5   : > { %1818 = vmatpush.bf16.msrb.mxu3 %v3259_v19  ;;  %s3418_s0 = scalar_lea.hbm %s3417_s3, 8  ;;  %p3423_p1 = scmp.lt.s32.totalorder %s3417_s3, %s4286_s18 }
 0x5e6   : > { %p3419_p12 = scmp.ne.s32.totalorder %s3417_s3, %s3418_s0  ;;  %p3424_p2 = scmp.lt.s32.totalorder %s3422_s24, %s3418_s0 }
 0x5e8   : > { %p3420_p13 = pnand %p3419_p12, %p3618_p4  ;;  %p3425_p3 = por %p3424_p2, %p3423_p1 }
 0x5e9   : > { %v1263_v56 = vpop.f32.mrf.mxu2  ;;  %1819 = vmatpush.bf16.msrb.mxu3 %v3258_v22 }
 0x5ea   : > { %p3421_p0 = pneg %p3420_p13 }
 0x5ec   : > { %p3426_p5 = pnand %p3425_p3, %p3421_p0 }
 0x5ed   : > { %1820 = vmatpush.bf16.msrb.mxu3 %v3257_v23 }
 0x5f1   : > { %v1489_v58 = vpop.f32.mrf.mxu2  ;;  %1821 = vmatpush.bf16.msrb.mxu3 %v3256_v24 }
 0x5f2   : > { %v1490_v59 = vadd.f32 %v3367_v57, %v1489_v58  ;;  %v3267_v58 = vld [vmem:[%s4274_s6 + $0xf8] sm:$0xff] }
 0x5f4   : > { %v1577_v60 = vpack.c.bf16 %v1490_v59, %v1490_v59  ;;  %1571 = vmatmul.bf16.vlgmr.msra.gmra.mxu3 %v3677_v20  ;;  %v3266_v59 = vld [vmem:[%s4274_s6 + $0xf0] sm:$0xff] }
 0x5f5   : > { %1822 = vmatpush.bf16.msrb.mxu3 %v3255_v25 }
 0x5f6   : > { %v1582_v61 = vsel %vm902_vm3, %v1577_v60, 0 }
 0x5f7   : > { %1591 = vmatpush.bf16.xpose.msrb.mxu0 %v1582_v61 }
 0x5f9   : > { %v1491_v63 = vpop.f32.mrf.mxu2  ;;  %1823 = vmatpush.bf16.msrb.mxu3 %v3254_v26 }
 0x5fa   : > { %v3264_v63 = vld [vmem:[%s4274_s6 + $0xe0] sm:$0xff] }
 0x5fd   : > { %1824 = vmatpush.bf16.msrb.mxu3 %v3253_v30 }
 0x5fe   : > { %2857 = vmatmul.msk.bf16.vlgmr.msrb.gmra.mxu0 %vm902_vm3, %v1576_v0  ;;  %v3263_v0 = vld [vmem:[%s4274_s6 + $0xd8] sm:$0xff] }
 0x601   : > { %v3948_v1 = vpop.f32.mrf.mxu2  ;;  %1825 = vmatpush.bf16.msrb.mxu3 %v3252_v39 }
 0x602   : > { %v1745_v56 = vadd.f32 %v3368_v55, %v3948_v1  ;;  %v3078_v55 = vld [vmem:[%s4282_s14 + $0x58] sm:$0xf0] }
 0x604   : > { %1826 = vmatmul.bf16.vlgmr.msrb.gmra.mxu3 %v3677_v20  ;;  %v1914_v57 = vpack.c.bf16 %v1745_v56, %v1745_v56 }
 0x609   : > { %v1746_v3 = vpop.f32.mrf.mxu2 }
 0x60a   : > { %v3262_v3 = vld [vmem:[%s4274_s6 + $0xd0] sm:$0xff] }
 0x667   : > { %v3956_v6 = vpop.f32.mrf.mxu3 }
 0x668   : > { %v1324_v60 = vadd.f32 %v3877_v21, %v3956_v6  ;;  %v3261_v21 = vld [vmem:[%s4274_s6 + $0xc8] sm:$0xff]  ;;  %v3260_v6 = vld [vmem:[%s4274_s6 + $0xc0] sm:$0xff] }
 0x66f   : > { %v1297_v9 = vpop.f32.mrf.mxu3 }
 0x677   : > { %v1572_v34 = vpop.f32.mrf.mxu3 }
 0x678   : > { %v1573_v35 = vadd.f32 %v3369_v33, %v1572_v34 }
 0x67a   : > { %v1610_v36 = vpack.c.bf16 %v1573_v35, %v1573_v35 }
 0x67b   : > { %v1593_v7 = vpop.f32.mrf.mxu0 }
 0x67c   : > { %v1597_v15 = vmul.f32 0.17677669, %v1593_v7  ;;  %v1615_v37 = vsel %vm940_vm5, %v1610_v36, 0 }
 0x67d   : > { %1624 = vmatpush.bf16.msra.mxu0 %v1615_v37 }
 0x67e   : > { %v1598_v17 = vsel %vm923_vm4, %v1597_v15, -inf }
 0x67f   : > { %1599 = vmax.xlane.f32.xlu0 %v1598_v17  ;;  %v1574_v38 = vpop.f32.mrf.mxu3 }
 0x681   : > { %1901 = vmatpush.bf16.msrb.mxu0 %v3267_v58  ;;  %v3279_v58 = vld [vmem:[%s4282_s14 + $0x44] sm:$0xf0] }
 0x683   : > { %v1595_v18 = vpop.f32.mrf.mxu0 }
 0x685   : > { %1902 = vmatpush.bf16.msrb.mxu0 %v3266_v59  ;;  %v3278_v59 = vld [vmem:[%s4282_s14 + $0x44] sm:$0xf] }
 0x687   : > { %v1827_v46 = vpop.f32.mrf.mxu3 }
 0x688   : > { %v1828_v48 = vadd.f32 %v3370_v45, %v1827_v46  ;;  %v3084_v45 = vld [vmem:[%s4282_s14 + $0x60] sm:$0xf]  ;;  %v3283_v46 = vld [vmem:[%s4282_s14 + $0x64] sm:$0xf0] }
 0x689   : > { %1903 = vmatpush.bf16.msrb.mxu0 %v3265_v2 }
 0x68a   : > { %v1915_v49 = vpack.c.bf16 %v1828_v48, %v1828_v48  ;;  %v3085_v48 = vor.u32 %v3283_v46, %v3084_v45  ;;  %v3289_v45 = vld [vmem:[%s4284_s16 + $0x18] sm:$0xff] }
 0x68c   : > { %v1920_v50 = vsel %vm902_vm3, %v1915_v49, 0  ;;  %v3086_v49 = vld [vmem:[%s4282_s14 + $0x68] sm:$0xf0] }
 0x68d   : > { %1929 = vmatpush.bf16.xpose.msra.mxu1 %v1920_v50  ;;  %1904 = vmatpush.bf16.msrb.mxu0 %v3264_v63  ;;  %v3089_v50 = vor.u32 %v3282_v47, %v3086_v49  ;;  %v3296_v47 = vld [vmem:[%s4284_s16 + $0x50] sm:$0xff] }
 0x68f   : > { %v1829_v51 = vpop.f32.mrf.mxu3 }
 0x690   : > { %v3076_v51 = vld [vmem:[%s4282_s14 + $0x50] sm:$0xf] }
 0x691   : > { %1905 = vmatpush.bf16.msrb.mxu0 %v3263_v0  ;;  %v3276_v0 = vld [vmem:[%s4282_s14 + $0x34] sm:$0xf] }
 0x695   : > { %1906 = vmatpush.bf16.msrb.mxu0 %v3262_v3 }
 0x699   : > { %1907 = vmatpush.bf16.msrb.mxu0 %v3261_v21 }
 0x69d   : > { %1908 = vmatpush.bf16.msrb.mxu0 %v3260_v6  ;;  %v3274_v6 = vld [vmem:[%s4282_s14 + $0x24] sm:$0xf] }
 0x6f2   : > { %v1600_v27 = vpop.xlane.xlu0 %1599 }
 0x6f3   : > { %v1601_v28 = vsub.f32 %v1597_v15, %v1600_v27  ;;  %v3371_v15 = vld [vmem:[%s4275_s7 + $0x3] ss:$0 sm:$0xff]  ;;  %v3268_v27 = vld [vmem:[%s4276_s8 + $0x30] sm:$0xff] }
 0x6f5   : > { %v1602_v29 = vmul.f32 1.442695, %v1601_v28 }
 0x6f7   : > { %3390 = vpow2.f32 %v1602_v29 }
 0x6fd   : > { %v3391_v31 = vpop.eup %3390 }
 0x6fe   : > { %v1604_v32 = vsel %vm923_vm4, %v3391_v31, 0.0 }
 0x6ff   : > { %1605 = vadd.xlane.f32.xlu1 %v1604_v32 }
 0x772   : > { %v1606_v41 = vpop.xlane.xlu1 %1605 }
 0x773   : > { %3392 = vrcp.f32 %v1606_v41  ;;  %v3285_v41 = vld [vmem:[%s4282_s14 + $0x74] sm:$0xf0] }
 0x779   : > { %v3393_v42 = vpop.eup %3392 }
 0x77a   : > { %v1608_v43 = vmul.f32 %v3393_v42, %v3391_v31  ;;  %v3372_v31 = vld [vmem:[%s4277_s9] ss:$0 sm:$0xff]  ;;  %v3284_v42 = vld [vmem:[%s4282_s14 + $0x74] sm:$0xf] }
 0x77c   : > { %v1609_v44 = vpack.c.bf16 %v1608_v43, %v1608_v43  ;;  %v3093_v43 = vor.u32 %v3285_v41, %v3092_v40  ;;  %v3290_v40 = vld [vmem:[%s4284_s16 + $0x20] sm:$0xff] }
 0x77e   : > { %2858 = vmatmul.msk.bf16.vlgmr.msra.gmra.mxu0 %vm923_vm4, %v1609_v44  ;;  %2144 = vmatpush.bf16.msra.mxu3 %v3093_v43 }
 0x782   : > { %2145 = vmatpush.bf16.msra.mxu3 %v3085_v48  ;;  %v3373_v48 = vld [vmem:[%s4280_s12] ss:$0 sm:$0xff] }
 0x78e   : > { %1909 = vmatmul.bf16.vlgmr.msrb.gmra.mxu0 %v3677_v20  ;;  %v3269_v20 = vld [vmem:[%s4276_s8 + $0x38] sm:$0xff] }
 0x78f   : > { %1995 = vmatpush.bf16.msrb.mxu2 %v3269_v20  ;;  %v3038_v20 = vld [vmem:[%s4282_s14 + $0x8] sm:$0xf0] }
 0x793   : > { %1996 = vmatpush.bf16.msrb.mxu2 %v3268_v27  ;;  %v3301_v27 = vld [vmem:[%s4284_s16 + $0x78] sm:$0xff] }
 0x797   : > { %2319 = vmatpush.bf16.msra.mxu2 %v3301_v27 }
 0x7fb   : > { %v1626_v52 = vpop.f32.mrf.mxu0 }
 0x7fc   : > { %v1630_v53 = vpack.c.bf16 %v1626_v52, %v1626_v52  ;;  %v3281_v52 = vld [vmem:[%s4282_s14 + $0x54] sm:$0xf0] }
 0x7fe   : > { %2871 = vmatmul.msk.bf16.vlgmr.msrb.gmra.mxu1 %vm902_vm3, %v1630_v53  ;;  %v3280_v53 = vld [vmem:[%s4282_s14 + $0x54] sm:$0xf] }
 0x7ff   : > { %v3081_v56 = vor.u32 %v3280_v53, %v3078_v55  ;;  %v3295_v55 = vld [vmem:[%s4284_s16 + $0x48] sm:$0xff] }
 0x803   : > { %v1628_v54 = vpop.f32.mrf.mxu0 }
 0x804   : > { %v3077_v54 = vor.u32 %v3281_v52, %v3076_v51  ;;  %v3374_v51 = vld [vmem:[%s4281_s13] ss:$0 sm:$0xff] }
 0x806   : > { %2146 = vmatpush.bf16.msra.mxu3 %v3077_v54 }
 0x80b   : > { %v1910_v16 = vpop.f32.mrf.mxu0 }
 0x80c   : > { %v1911_v17 = vadd.f32 %v3371_v15, %v1910_v16 }
 0x80e   : > { %3019 = vmatmul.msk.bf16.vlgmr.msra.gmra.mxu1 %vm902_vm3, %v1914_v57  ;;  %v1948_v18 = vpack.c.bf16 %v1911_v17, %v1911_v17  ;;  %v3068_v57 = vld [vmem:[%s4282_s14 + $0x40] sm:$0xf] }
 0x80f   : > { %v3069_v2 = vor.u32 %v3279_v58, %v3068_v57  ;;  %v3036_v17 = vld [vmem:[%s4282_s14] sm:$0xf]  ;;  %v3287_v57 = vld [vmem:[%s4284_s16 + $0x8] sm:$0xff] }
 0x810   : > { %v1953_v19 = vsel %vm940_vm5, %v1948_v18, 0  ;;  %v3271_v18 = vld [vmem:[%s4282_s14 + $0x4] sm:$0xf0]  ;;  %v3286_v58 = vld [vmem:[%s4284_s16] sm:$0xff] }
 0x811   : > { %1962 = vmatpush.bf16.msrb.mxu1 %v1953_v19  ;;  %2147 = vmatpush.bf16.msra.mxu3 %v3069_v2 }
 0x813   : > { %v1912_v22 = vpop.f32.mrf.mxu0 }
 0x814   : > { %v3270_v22 = vld [vmem:[%s4282_s14 + $0x4] sm:$0xf] }
 0x87b   : > { %v1660_v61 = vpop.f32.mrf.mxu1 }
 0x87c   : > { %v1664_v62 = vadd.f32 %v1660_v61, %v1324_v60  ;;  %v3070_v60 = vld [vmem:[%s4282_s14 + $0x48] sm:$0xf0]  ;;  %v3060_v61 = vld [vmem:[%s4282_s14 + $0x30] sm:$0xf] }
 0x87d   : > { %v3073_v63 = vor.u32 %v3278_v59, %v3070_v60  ;;  %v2058_v59 = vld [vmem:[%s4283_s15] sm:$0x3] }
 0x87e   : > { %v2061_v2 = vperm.slane %v2058_v59, 1 }
 0x883   : > { %v1662_v1 = vpop.f32.mrf.mxu1 }
 0x884   : > { %v3062_v1 = vld [vmem:[%s4282_s14 + $0x38] sm:$0xf0] }
 0x885   : > { %v3065_v21 = vor.u32 %v3276_v0, %v3062_v1 }
 0x88b   : > { %v1931_v4 = vpop.f32.mrf.mxu1 }
 0x88c   : > { %v1935_v5 = vmul.f32 0.17677669, %v1931_v4  ;;  %v3052_v4 = vld [vmem:[%s4282_s14 + $0x20] sm:$0xf] }
 0x88e   : > { %v1936_v11 = vsel %vm923_vm4, %v1935_v5, -inf }
 0x88f   : > { %1937 = vmax.xlane.f32.xlu2 %v1936_v11  ;;  %v3054_v11 = vld [vmem:[%s4282_s14 + $0x28] sm:$0xf0] }
 0x893   : > { %v1933_v8 = vpop.f32.mrf.mxu1 }
 0x902   : > { %v1938_v9 = vpop.xlane.xlu2 %1937 }
 0x903   : > { %v1939_v10 = vsub.f32 %v1935_v5, %v1938_v9  ;;  %v3275_v5 = vld [vmem:[%s4282_s14 + $0x24] sm:$0xf0]  ;;  %v3057_v9 = vor.u32 %v3274_v6, %v3054_v11  ;;  %v3375_v11 = vld [vmem:[%s4285_s17] ss:$0 sm:$0xff] }
 0x904   : > { %v3053_v8 = vor.u32 %v3275_v5, %v3052_v4 }
 0x905   : > { %v1940_v12 = vmul.f32 1.442695, %v1939_v10  ;;  %v3044_v10 = vld [vmem:[%s4282_s14 + $0x10] sm:$0xf] }
 0x907   : > { %3394 = vpow2.f32 %v1940_v12  ;;  %v3273_v12 = vld [vmem:[%s4282_s14 + $0x14] sm:$0xf0] }
 0x908   : > { %v3045_v15 = vor.u32 %v3273_v12, %v3044_v10 }
 0x90d   : > { %v3395_v13 = vpop.eup %3394 }
 0x90e   : > { %v1942_v7 = vsel %vm923_vm4, %v3395_v13, 0.0 }
 0x90f   : > { %1943 = vadd.xlane.f32.xlu0 %v1942_v7  ;;  %v3046_v7 = vld [vmem:[%s4282_s14 + $0x18] sm:$0xf0] }
 0x982   : > { %v1944_v23 = vpop.xlane.xlu0 %1943 }
 0x983   : > { %3396 = vrcp.f32 %v1944_v23 }
 0x989   : > { %v3397_v24 = vpop.eup %3396 }
 0x98a   : > { %v1946_v25 = vmul.f32 %v3397_v24, %v3395_v13  ;;  %v3272_v13 = vld [vmem:[%s4282_s14 + $0x14] sm:$0xf]  ;;  %v3037_v24 = vor.u32 %v3271_v18, %v3036_v17 }
 0x98b   : > { %v3049_v16 = vor.u32 %v3272_v13, %v3046_v7 }
 0x98c   : > { %v1947_v26 = vpack.c.bf16 %v1946_v25, %v1946_v25  ;;  %v3041_v25 = vor.u32 %v3270_v22, %v3038_v20 }
 0x98e   : > { %3020 = vmatmul.msk.bf16.vlgmr.msrb.gmra.mxu1 %vm923_vm4, %v1947_v26 }
 0xa0b   : > { %v1964_v28 = vpop.f32.mrf.mxu1 }
 0xa0c   : > { %v1968_v29 = vpack.c.bf16 %v1964_v28, %v1964_v28  ;;  %v3293_v28 = vld [vmem:[%s4284_s16 + $0x38] sm:$0xff] }
 0xa0d   : > { %2306 = vmatpush.bf16.msra.mxu1 %v3293_v28 }
 0xa0e   : > { %3033 = vmatmul.msk.bf16.vlgmr.msrb.gmra.mxu2 %vm902_vm3, %v1968_v29 }
 0xa13   : > { %v1966_v30 = vpop.f32.mrf.mxu1 }
 0xa14   : > { %v3300_v30 = vld [vmem:[%s4284_s16 + $0x70] sm:$0xff] }
 0xa15   : > { %2320 = vmatpush.bf16.msra.mxu2 %v3300_v30 }
 0xa91   : > { %v1998_v32 = vpop.f32.mrf.mxu2 }
 0xa92   : > { %v2002_v33 = vadd.f32 %v1998_v32, %v1664_v62  ;;  %v3277_v62 = vld [vmem:[%s4282_s14 + $0x34] sm:$0xf0] }
 0xa93   : > { %v3061_v3 = vor.u32 %v3277_v62, %v3060_v61 }
 0xa94   : > { %v2007_v34 = vadd.f32 %v3372_v31, %v2002_v33  ;;  %v3292_v31 = vld [vmem:[%s4284_s16 + $0x30] sm:$0xff] }
 0xa95   : > { %2148 = vmatpush.bf16.msra.mxu3 %v3061_v3  ;;  %2307 = vmatpush.bf16.msra.mxu1 %v3292_v31 }
 0xa96   : > { %2010 = vadd.xlane.f32.xlu1 %v2007_v34 }
 0xa99   : > { %v2000_v35 = vpop.f32.mrf.mxu2  ;;  %2149 = vmatpush.bf16.msra.mxu3 %v3053_v8 }
 0xa9a   : > { %v3291_v35 = vld [vmem:[%s4284_s16 + $0x28] sm:$0xff] }
 0xa9b   : > { %2308 = vmatpush.bf16.msra.mxu1 %v3291_v35 }
 0xa9d   : > { %2150 = vmatpush.bf16.msra.mxu3 %v3045_v15 }
 0xa9f   : > { %2309 = vmatpush.bf16.msra.mxu1 %v3290_v40 }
 0xaa1   : > { %2151 = vmatpush.bf16.msra.mxu3 %v3037_v24 }
 0xaa3   : > { %2310 = vmatpush.bf16.msra.mxu1 %v3289_v45 }
 0xb09   : > { %v2011_v36 = vpop.xlane.xlu1 %2010 }
 0xb0a   : > { %v2012_v37 = vmul.f32 %v2011_v36, %v3662_v14  ;;  %v3094_v14 = vld [vmem:[%s4282_s14 + $0x78] sm:$0xf0] }
 0xb0b   : > { %v3097_v44 = vor.u32 %v3284_v42, %v3094_v14 }
 0xb0c   : > { %v4070_v38 = vsub.f32 %v2007_v34, %v2012_v37  ;;  %v3299_v34 = vld [vmem:[%s4284_s16 + $0x68] sm:$0xff] }
 0xb0d   : > { %2157 = vmatpush.bf16.msra.mxu0 %v3097_v44  ;;  %2321 = vmatpush.bf16.msra.mxu2 %v3299_v34  ;;  %v3297_v44 = vld [vmem:[%s4284_s16 + $0x58] sm:$0xff] }
 0xb0e   : > { %v2014_v39 = vmul.f32 %v4070_v38, %v4070_v38 }
 0xb10   : > { %2015 = vadd.xlane.f32.xlu2 %v2014_v39  ;;  %v3298_v39 = vld [vmem:[%s4284_s16 + $0x60] sm:$0xff] }
 0xb11   : > { %2158 = vmatpush.bf16.msra.mxu0 %v3089_v50  ;;  %2322 = vmatpush.bf16.msra.mxu2 %v3298_v39 }
 0xb15   : > { %2159 = vmatpush.bf16.msra.mxu0 %v3081_v56  ;;  %2323 = vmatpush.bf16.msra.mxu2 %v3297_v44  ;;  %v3288_v56 = vld [vmem:[%s4284_s16 + $0x10] sm:$0xff] }
 0xb16   : > { %2311 = vmatpush.bf16.msra.mxu1 %v3288_v56 }
 0xb19   : > { %2160 = vmatpush.bf16.msra.mxu0 %v3073_v63  ;;  %2324 = vmatpush.bf16.msra.mxu2 %v3296_v47  ;;  %v2060_v63 = vperm.slane %v2058_v59, 0 }
 0xb1a   : > { %2312 = vmatpush.bf16.msra.mxu1 %v3287_v57 }
 0xb1d   : > { %2161 = vmatpush.bf16.msra.mxu0 %v3065_v21  ;;  %2325 = vmatpush.bf16.msra.mxu2 %v3295_v55 }
 0xb1e   : > { %2313 = vmatpush.bf16.msra.mxu1 %v3286_v58 }
 0xb21   : > { %2162 = vmatpush.bf16.msra.mxu0 %v3057_v9 }
 0xb25   : > { %2163 = vmatpush.bf16.msra.mxu0 %v3049_v16 }
 0xb29   : > { %2164 = vmatpush.bf16.msra.mxu0 %v3041_v25 }
 0xb83   : > { %v2016_v19 = vpop.xlane.xlu2 %2015 }
 0xb84   : > { %v2017_v23 = vmul.f32 0.007874016, %v2016_v19 }
 0xb86   : > { %3398 = vrsqrt.f32 %v2017_v23  ;;  %vm2025_vm6 = vcmp.eq.f32.partialorder %v2017_v23, inf  ;;  %v2028_v42 = vand.u32 2147483648, %v2017_v23  ;;  %vm2027_vm7 = vcmp.eq.f32.partialorder %v2017_v23, 0.0 }
 0xb8c   : > { %v3399_v26 = vpop.eup %3398 }
 0xb8d   : > { %v2019_v29 = vmul.f32 %v3399_v26, %v2017_v23 }
 0xb8f   : > { %v2020_v32 = vmul.f32 %v3399_v26, %v2019_v29 }
 0xb91   : > { %v2021_v33 = vmul.f32 0.5, %v2020_v32 }
 0xb93   : > { %v2022_v36 = vsub.f32 1.5, %v2021_v33 }
 0xb95   : > { %v2023_v37 = vmul.f32 %v3399_v26, %v2022_v36 }
 0xb97   : > { %v2024_v41 = vmul.f32 %v2023_v37, %v2017_v23 }
 0xb99   : > { %v2026_v43 = vsel %vm2025_vm6, %v2017_v23, %v2024_v41 }
 0xb9a   : > { %v2029_v14 = vsel %vm2027_vm7, %v2028_v42, %v2026_v43 }
 0xb9b   : > { %v2030_v46 = vadd.f32 1e-06, %v2029_v14 }
 0xb9d   : > { %3400 = vrcp.f32 %v2030_v46 }
 0xba3   : > { %v3401_v49 = vpop.eup %3400 }
 0xba4   : > { %v2032_v50 = vmul.f32 %v3401_v49, %v4070_v38  ;;  %v3294_v38 = vld [vmem:[%s4284_s16 + $0x40] sm:$0xff] }
 0xba5   : > { %2326 = vmatpush.bf16.msra.mxu2 %v3294_v38 }
 0xba6   : > { %v2036_v52 = vmul.f32 %v3373_v48, %v2032_v50 }
 0xba8   : > { %v2040_v53 = vadd.f32 %v3374_v51, %v2036_v52 }
 0xbaa   : > { %v2041_v54 = vpack.c.bf16 %v2040_v53, %v2040_v53 }
 0xbac   : > { %2152 = vmatmul.bf16.vlgmr.msra.gmra.mxu3 %v2041_v54  ;;  %2165 = vmatmul.bf16.vlgmr.msra.gmra.mxu0 %v2041_v54 }
 0xc29   : > { %v2166_v60 = vpop.f32.mrf.mxu0 }
 0xc2a   : > { %v2167_v61 = vadd.f32 %v2166_v60, %v2061_v2 }
 0xc2c   : > { %v2171_v62 = vmax.f32 %v2167_v61, 0.0 }
 0xc2e   : > { %v2173_v0 = vpack.c.bf16 %v2171_v62, %v2171_v62 }
 0xc2f   : > { %v2153_v1 = vpop.f32.mrf.mxu3 }
 0xc30   : > { %v2154_v3 = vadd.f32 %v2153_v1, %v2060_v63  ;;  %2327 = vmatmul.bf16.vlgmr.msra.gmra.mxu2 %v2173_v0 }
 0xc31   : > { %v2168_v21 = vpop.f32.mrf.mxu0 }
 0xc32   : > { %v2170_v4 = vmax.f32 %v2154_v3, 0.0 }
 0xc34   : > { %v2172_v5 = vpack.c.bf16 %v2170_v4, %v2170_v4 }
 0xc36   : > { %2314 = vmatmul.bf16.vlgmr.msra.gmra.mxu1 %v2172_v5 }
 0xc37   : > { %v2155_v6 = vpop.f32.mrf.mxu3 }
 0xcb3   : > { %v2315_v8 = vpop.f32.mrf.mxu1  ;;  %v2328_v9 = vpop.f32.mrf.mxu2 }
 0xcb4   : > { %v2316_v10 = vadd.f32 %v3375_v11, %v2315_v8 }
 0xcb6   : > { %v2329_v12 = vadd.f32 %v2328_v9, %v2316_v10 }
 0xcb8   : > { %2332 = vst [vmem:[%s601_s25] sm:$0xff] %v2329_v12 }
 0xcb9   : > { %3429 = shalt.err (!%p3426_p5)
}
 0xcba   : > { %3302 = dma.vmem_to_hbm [thread:$0]  (%p3618_p4), %s2348_s26, 128, %s2350_s27, %s2334_s30  }
 0xcbb   : > { %v2317_v13 = vpop.f32.mrf.mxu1  ;;  %v2330_v7 = vpop.f32.mrf.mxu2 }
 0xcbc PF: > { %s4312_s19 = sld [smem:[#allocation8_spill]] }
 0xcbd   : > { %s4313_s29 = sld [smem:[#allocation5_spill]] }
 0xcc2   : > { %p3308_p6 = scmp.ge.s32.totalorder %s4312_s19, 2 }
 0xcc3   : > { %s2361_s22 = sand.u32 1, %s4313_s29  }
 0xcc4   : > { %p3305_p7 = pnand %p3308_p6, %p3625_p8  ;;  %s2362_s21 = scalar_lea.sflag [#allocation3], %s2361_s22 }
 0xcc6   : > { %p3306_p9 = pneg %p3305_p7 }
 0xcc8   : > { %3455 = dma.done.wait (%p3306_p9), %s2362_s21, 128  }
 0xcc9   : > { %3457 = vsyncadd (%p3306_p9), %s2362_s21, 4294967168  ;;  %s31_s19 = sadd.s32 1, %s4312_s19   ;;  %s4315_s3 = sld [smem:[#allocation6_spill]] }
 0xcca   : > { %p28_p10 = scmp.ge.s32.totalorder %s31_s19, 4   ;;  %s4316_s29 = sld [smem:[#allocation11_spill]] }
 0xccb   : > { %s4317_s30 = sld [smem:[#allocation7_spill]]  ;;  %s4319_s27 = smov %s3464_s28 }
 0xccc   : > { %s4318_s0 = sld [smem:[#allocation9_spill]]  ;;  %30 = sbr.rel (!%p28_p10) target bundleno = 9 (0x9), region = 151 }
 0xccf   : > { %s4320_s28 = smov %s4315_s3 }
 0xcd1   :  { %2368 = vsyncpa [#allocation3], 1 }
 0xcd2   :  { %2370 = vsyncpa [#allocation3 + $0x1], 1 }

</bundles_post_ra>
